<compile_context>
chip_gen: v5e
topology: v5e:2x2
jax: 0.10.0
libtpu: 0.0.40
codegen_flags: <defaults>
</compile_context>

<pallas_src>
import jax
import jax.numpy as jnp
import numpy as np
from jax.experimental import pallas as pl
from jax.experimental.pallas import tpu as pltpu


# -----------------------------------------------------------------------------
# Pallas kernel: fused input projection + LSTM recurrence + fc + sigmoid
# -----------------------------------------------------------------------------
def lstm1d2_kernel(x_ref,      # (N, C*D)  flattened inputs
                   w_in_ref,   # (C*D, 4H) softconv folded into fused W_ih (i,f,o,g)
                   b_in_ref,   # (1, 4H)   fused bias (conv bias folded in)
                   w_hh_ref,   # (H, 4H)   fused recurrent weights (i,f,o,g)
                   w_fc_ref,   # (H, O)
                   b_fc_ref,   # (1, O)
                   merged_ref,  # out: (N, 2*O) = [sigmoid(out) | out]
                   pre_ref,    # scratch: (N, 4H) precomputed input pre-activations
                   hrows_ref):  # scratch: (N, H)  hidden state per timestep
    N = x_ref.shape[0]
    H = w_hh_ref.shape[0]

    # ---- input projection for ALL timesteps at once (softconv folded in) ----
    # (N, C*D) @ (C*D, 4H) + (1, 4H): one lane-dense MXU matmul, off the
    # serial critical path.
    pre_ref[...] = (
        jnp.dot(x_ref[...], w_in_ref[...], preferred_element_type=jnp.float32)
        + b_in_ref[...])

    # Hoist the loop-invariant fused recurrent weight out of the loop.
    w_hh = w_hh_ref[...]                                            # (H, 4H)

    # ---- LSTM recurrence: (1,H)@(H,4H) matmul + minimal EUP work per step ----
    def step(t, carry):
        h, c = carry                                                # (1,H), (1,H)
        z = pre_ref[pl.ds(t, 1), :] + jnp.dot(
            h, w_hh, preferred_element_type=jnp.float32)            # (1, 4H)
        # sigmoid only over the i|f|o lanes, tanh ONLY over the g lanes:
        # removes one full-vreg EUP push per serial step.
        s = jax.nn.sigmoid(z[:, 0:3 * H])                           # (1, 3H)
        i_g = s[:, 0 * H:1 * H]
        f_g = s[:, 1 * H:2 * H]
        o_g = s[:, 2 * H:3 * H]
        g_g = jnp.tanh(z[:, 3 * H:4 * H])                           # (1, H)
        c_new = f_g * c + i_g * g_g
        h_new = o_g * jnp.tanh(c_new)
        hrows_ref[pl.ds(t, 1), :] = h_new
        return (h_new, c_new)

    h0 = jnp.zeros((1, H), jnp.float32)
    c0 = jnp.zeros((1, H), jnp.float32)
    jax.lax.fori_loop(0, N, step, (h0, c0), unroll=True)

    # ---- fc + sigmoid epilogue: bulk matmul, bulk EUP, ONE merged output ----
    y = (jnp.dot(hrows_ref[...], w_fc_ref[...],
                 preferred_element_type=jnp.float32) + b_fc_ref[...])   # (N, O)
    merged_ref[...] = jnp.concatenate([jax.nn.sigmoid(y), y], axis=-1)  # (N, 2O)


# -----------------------------------------------------------------------------
# One-time parameter fusion (layout prep only; call once at init, NOT per step)
# -----------------------------------------------------------------------------
def fuse_params(params):
    """Build lane-dense fused operands; gate order reordered to (i, f, o, g)."""
    C = params["conv_w"].shape[1]
    D = params["w_ih"].shape[1]
    H = params["w_hh"].shape[-1]
    order = (0, 1, 3, 2)                      # PyTorch order is (i, f, g, o)

    w_ih_f = jnp.concatenate([params["w_ih"][k] for k in order], axis=-1)   # (D, 4H)
    w_hh_f = jnp.concatenate([params["w_hh"][k] for k in order], axis=-1)   # (H, 4H)
    b_f = jnp.concatenate([params["b_gates"][k] for k in order], axis=-1)   # (1, 4H)

    # Fold the 1x1 softconv (channel-weighted sum + bias) into the fused input
    # projection:  pre = (sum_c w_c * x[:,c,:] + b_conv) @ W_ih + b
    #            = x_flat @ (w_c ⊗ W_ih) + (b_conv * sum_d W_ih[d] + b)
    w_in = (params["conv_w"].reshape(C, 1, 1) * w_ih_f[None, :, :]
            ).reshape(C * D, 4 * H)                                          # (C*D, 4H)
    b_in = params["conv_b"][0, 0] * jnp.sum(w_ih_f, axis=0, keepdims=True) + b_f

    return dict(w_in=jax.device_put(w_in),
                b_in=jax.device_put(b_in),
                w_hh=jax.device_put(w_hh_f),
                w_fc=jax.device_put(params["w_fc"]),
                b_fc=jax.device_put(params["b_fc"]))


# -----------------------------------------------------------------------------
# Forward wrapper: takes already-fused params; jit-friendly
# -----------------------------------------------------------------------------
def lstm1d2_forward(inputs, times, fused):
    """Returns (sigmoid(out), out).  `times` is unused by the module's forward."""
    del times  # accepted for interface fidelity; never consumed by forward()
    N, C, D = inputs.shape
    H = fused["w_hh"].shape[0]
    O = fused["w_fc"].shape[-1]

    x_flat = inputs.reshape(N, C * D)         # layout plumbing only

    vmem = pl.BlockSpec(memory_space=pltpu.MemorySpace.VMEM)
    merged = pl.pallas_call(
        lstm1d2_kernel,
        out_shape=jax.ShapeDtypeStruct((N, 2 * O), jnp.float32),
        in_specs=[vmem] * 6,
        out_specs=vmem,
        scratch_shapes=[pltpu.VMEM((N, 4 * H), jnp.float32),   # pre-activations
                        pltpu.VMEM((N, H), jnp.float32)],      # hidden rows
    )(x_flat, fused["w_in"], fused["b_in"], fused["w_hh"],
      fused["w_fc"], fused["b_fc"])

    sig = merged[:, :O]
    out = merged[:, O:]
    return sig, out


# -----------------------------------------------------------------------------
# Pure-JAX reference (unfused, PyTorch gate order) for correctness check
# -----------------------------------------------------------------------------
def reference_forward(inputs, times, params):
    del times
    N, C, D = inputs.shape
    H = params["w_hh"].shape[-1]
    feat = jnp.einsum("ncd,c->nd", inputs, params["conv_w"][0]) + params["conv_b"][0, 0]

    w_ih, w_hh, b = params["w_ih"], params["w_hh"], params["b_gates"]

    def step(carry, x_t):
        h, c = carry

        def gate(k):
            return x_t @ w_ih[k] + h @ w_hh[k] + b[k, 0]

        i = jax.nn.sigmoid(gate(0))
        f = jax.nn.sigmoid(gate(1))
        g = jnp.tanh(gate(2))
        o = jax.nn.sigmoid(gate(3))
        c = f * c + i * g
        h = o * jnp.tanh(c)
        return (h, c), h

    (_, _), hs = jax.lax.scan(step, (jnp.zeros((H,)), jnp.zeros((H,))), feat)
    out = hs @ params["w_fc"] + params["b_fc"][0]
    return jax.nn.sigmoid(out), out


# -----------------------------------------------------------------------------
# Deterministic parameter construction (shapes from LSTM_1d_2.__init__)
# -----------------------------------------------------------------------------
def make_params(key, cnn_dim, input_dim, hidden_dim, output_dim):
    C, D, H, O = cnn_dim, input_dim, hidden_dim, output_dim
    ks = jax.random.split(key, 8)

    # Conv1d(cnn_dim, 1, k=1) weight sampled from Weibull(scale=1, k=3):
    #   X = (-ln U)^(1/3)  (inverse-CDF transform)
    u = jax.random.uniform(ks[0], (1, C), minval=1e-4, maxval=1.0 - 1e-4)
    conv_w = jnp.power(-jnp.log(u), 1.0 / 3.0).astype(jnp.float32)      # (1, C)
    sc = 1.0 / np.sqrt(C)
    conv_b = jax.random.uniform(ks[1], (1, 1), jnp.float32, -sc, sc)

    # LSTM (single layer, unidirectional), PyTorch gate order (i, f, g, o).
    s = 1.0 / np.sqrt(H)
    w_ih = jax.random.uniform(ks[2], (4, D, H), jnp.float32, -s, s)
    w_hh = jax.random.uniform(ks[3], (4, H, H), jnp.float32, -s, s)
    b_ih = jax.random.uniform(ks[4], (4, 1, H), jnp.float32, -s, s)
    b_hh = jax.random.uniform(ks[5], (4, 1, H), jnp.float32, -s, s)

    # fc: Linear(hidden_dim, output_dim)
    w_fc = jax.random.uniform(ks[6], (H, O), jnp.float32, -s, s)
    b_fc = jax.random.uniform(ks[7], (1, O), jnp.float32, -s, s)

    return dict(conv_w=conv_w, conv_b=conv_b,
                w_ih=w_ih, w_hh=w_hh, b_gates=b_ih + b_hh,
                w_fc=w_fc, b_fc=b_fc)


if __name__ == "__main__":
    # Module config: LSTM_1d_2(cnn_dim=4, input_dim=16, hidden_dim=32,
    #                          output_dim=8, layer_num=1, is_bidirectional=False)
    cnn_dim, input_dim, hidden_dim, output_dim = 4, 16, 32, 8
    seq_len = 16

    key = jax.random.PRNGKey(0)
    k_in, k_t, k_p = jax.random.split(key, 3)

    inputs = jax.random.normal(k_in, (seq_len, cnn_dim, input_dim), jnp.float32)
    times = jnp.cumsum(
        jax.random.uniform(k_t, (seq_len, 1), jnp.float32, 0.0, 10.0), axis=0)
    params = make_params(k_p, cnn_dim, input_dim, hidden_dim, output_dim)

    # Parameter fusion happens ONCE here (not on every forward call).
    fused = fuse_params(params)
    forward = jax.jit(lstm1d2_forward)

    sig, out = forward(inputs, times, fused)
    sig, out = jax.block_until_ready((sig, out))

    # Correctness check against the pure-JAX (unfused) reference.
    ref_sig, ref_out = reference_forward(inputs, times, params)
    np.testing.assert_allclose(np.asarray(out), np.asarray(ref_out),
                               rtol=1e-4, atol=1e-4)
    np.testing.assert_allclose(np.asarray(sig), np.asarray(ref_sig),
                               rtol=1e-4, atol=1e-4)

    print("KERNEL_OK")
</pallas_src>

<mosaic_0001>
module attributes {stable_mosaic.version = 11 : i64} {
  func.func @lstm1d2_kernel(%arg0: memref<16x64xf32, #tpu.memory_space<vmem>>, %arg1: memref<64x128xf32, #tpu.memory_space<vmem>>, %arg2: memref<1x128xf32, #tpu.memory_space<vmem>>, %arg3: memref<32x128xf32, #tpu.memory_space<vmem>>, %arg4: memref<32x8xf32, #tpu.memory_space<vmem>>, %arg5: memref<1x8xf32, #tpu.memory_space<vmem>>, %arg6: memref<16x16xf32, #tpu.memory_space<vmem>>, %arg7: memref<16x128xf32, #tpu.memory_space<vmem>>, %arg8: memref<16x32xf32, #tpu.memory_space<vmem>>) attributes {dimension_semantics = [], scalar_prefetch = 0 : i64, scratch_operands = 2 : i64, tpu.core_type = #tpu.core_type<tc>} {
    %c0 = arith.constant 0 : index
    %c0_0 = arith.constant 0 : index
    %0 = vector.load %arg0[%c0, %c0_0] : memref<16x64xf32, #tpu.memory_space<vmem>>, vector<16x64xf32>
    %c0_1 = arith.constant 0 : index
    %c0_2 = arith.constant 0 : index
    %1 = vector.load %arg1[%c0_1, %c0_2] : memref<64x128xf32, #tpu.memory_space<vmem>>, vector<64x128xf32>
    %cst = arith.constant dense<0.000000e+00> : vector<16x128xf32>
    %2 = tpu.matmul %0, %1, %cst {dimension_numbers = #tpu.dot_dimension_numbers<[1], [0], [0], [1], [0, 0, 1, 1], [], []>} : vector<16x64xf32>, vector<64x128xf32>, vector<16x128xf32> -> vector<16x128xf32>
    %c0_3 = arith.constant 0 : index
    %c0_4 = arith.constant 0 : index
    %3 = vector.load %arg2[%c0_3, %c0_4] : memref<1x128xf32, #tpu.memory_space<vmem>>, vector<1x128xf32>
    %4 = vector.broadcast %3 : vector<1x128xf32> to vector<16x128xf32>
    %5 = arith.addf %2, %4 : vector<16x128xf32>
    %c0_5 = arith.constant 0 : index
    %c0_6 = arith.constant 0 : index
    %6 = vector.load %arg7[%c0_5, %c0_6] : memref<16x128xf32, #tpu.memory_space<vmem>>, vector<16x128xf32>
    tpu.vector_store %arg7[%c0_5, %c0_6], %5 {strides = array<i32>} : memref<16x128xf32, #tpu.memory_space<vmem>>, vector<16x128xf32>,
    %c0_7 = arith.constant 0 : index
    %c0_8 = arith.constant 0 : index
    %7 = vector.load %arg3[%c0_7, %c0_8] : memref<32x128xf32, #tpu.memory_space<vmem>>, vector<32x128xf32>
    %cst_9 = arith.constant 0.000000e+00 : f32
    %8 = vector.broadcast %cst_9 : f32 to vector<1x32xf32>
    %cst_10 = arith.constant 0.000000e+00 : f32
    %9 = vector.broadcast %cst_10 : f32 to vector<1x32xf32>
    %c0_i32 = arith.constant 0 : i32
    %10 = arith.index_cast %c0_i32 : i32 to index
    %c0_11 = arith.constant 0 : index
    %11 = vector.load %arg7[%10, %c0_11] : memref<16x128xf32, #tpu.memory_space<vmem>>, vector<1x128xf32>
    %cst_12 = arith.constant dense<0.000000e+00> : vector<1x128xf32>
    %12 = tpu.matmul %8, %7, %cst_12 {dimension_numbers = #tpu.dot_dimension_numbers<[1], [0], [0], [1], [0, 0, 1, 1], [], []>} : vector<1x32xf32>, vector<32x128xf32>, vector<1x128xf32> -> vector<1x128xf32>
    %13 = arith.addf %11, %12 : vector<1x128xf32>
    %14 = vector.extract_strided_slice %13 {offsets = [0, 0], sizes = [1, 96], strides = [1, 1]} : vector<1x128xf32> to vector<1x96xf32>
    %15 = arith.negf %14 : vector<1x96xf32>
    %16 = math.exp %15 : vector<1x96xf32>
    %cst_13 = arith.constant 1.000000e+00 : f32
    %17 = vector.broadcast %cst_13 : f32 to vector<1x96xf32>
    %18 = arith.addf %17, %16 : vector<1x96xf32>
    %19 = arith.divf %17, %18 : vector<1x96xf32>
    %20 = vector.extract_strided_slice %19 {offsets = [0, 0], sizes = [1, 32], strides = [1, 1]} : vector<1x96xf32> to vector<1x32xf32>
    %21 = vector.extract_strided_slice %19 {offsets = [0, 32], sizes = [1, 32], strides = [1, 1]} : vector<1x96xf32> to vector<1x32xf32>
    %22 = vector.extract_strided_slice %19 {offsets = [0, 64], sizes = [1, 32], strides = [1, 1]} : vector<1x96xf32> to vector<1x32xf32>
    %23 = vector.extract_strided_slice %13 {offsets = [0, 96], sizes = [1, 32], strides = [1, 1]} : vector<1x128xf32> to vector<1x32xf32>
    %24 = math.tanh %23 : vector<1x32xf32>
    %25 = arith.mulf %21, %9 : vector<1x32xf32>
    %26 = arith.mulf %20, %24 : vector<1x32xf32>
    %27 = arith.addf %25, %26 : vector<1x32xf32>
    %28 = math.tanh %27 : vector<1x32xf32>
    %29 = arith.mulf %22, %28 : vector<1x32xf32>
    %30 = arith.index_cast %c0_i32 : i32 to index
    %c0_14 = arith.constant 0 : index
    %31 = vector.load %arg8[%30, %c0_14] : memref<16x32xf32, #tpu.memory_space<vmem>>, vector<1x32xf32>
    tpu.vector_store %arg8[%30, %c0_14], %29 {strides = array<i32>} : memref<16x32xf32, #tpu.memory_space<vmem>>, vector<1x32xf32>,
    %c1_i32 = arith.constant 1 : i32
    %32 = arith.index_cast %c1_i32 : i32 to index
    %c0_15 = arith.constant 0 : index
    %33 = vector.load %arg7[%32, %c0_15] : memref<16x128xf32, #tpu.memory_space<vmem>>, vector<1x128xf32>
    %cst_16 = arith.constant dense<0.000000e+00> : vector<1x128xf32>
    %34 = tpu.matmul %29, %7, %cst_16 {dimension_numbers = #tpu.dot_dimension_numbers<[1], [0], [0], [1], [0, 0, 1, 1], [], []>} : vector<1x32xf32>, vector<32x128xf32>, vector<1x128xf32> -> vector<1x128xf32>
    %35 = arith.addf %33, %34 : vector<1x128xf32>
    %36 = vector.extract_strided_slice %35 {offsets = [0, 0], sizes = [1, 96], strides = [1, 1]} : vector<1x128xf32> to vector<1x96xf32>
    %37 = arith.negf %36 : vector<1x96xf32>
    %38 = math.exp %37 : vector<1x96xf32>
    %cst_17 = arith.constant 1.000000e+00 : f32
    %39 = vector.broadcast %cst_17 : f32 to vector<1x96xf32>
    %40 = arith.addf %39, %38 : vector<1x96xf32>
    %41 = arith.divf %39, %40 : vector<1x96xf32>
    %42 = vector.extract_strided_slice %41 {offsets = [0, 0], sizes = [1, 32], strides = [1, 1]} : vector<1x96xf32> to vector<1x32xf32>
    %43 = vector.extract_strided_slice %41 {offsets = [0, 32], sizes = [1, 32], strides = [1, 1]} : vector<1x96xf32> to vector<1x32xf32>
    %44 = vector.extract_strided_slice %41 {offsets = [0, 64], sizes = [1, 32], strides = [1, 1]} : vector<1x96xf32> to vector<1x32xf32>
    %45 = vector.extract_strided_slice %35 {offsets = [0, 96], sizes = [1, 32], strides = [1, 1]} : vector<1x128xf32> to vector<1x32xf32>
    %46 = math.tanh %45 : vector<1x32xf32>
    %47 = arith.mulf %43, %27 : vector<1x32xf32>
    %48 = arith.mulf %42, %46 : vector<1x32xf32>
    %49 = arith.addf %47, %48 : vector<1x32xf32>
    %50 = math.tanh %49 : vector<1x32xf32>
    %51 = arith.mulf %44, %50 : vector<1x32xf32>
    %52 = arith.index_cast %c1_i32 : i32 to index
    %c0_18 = arith.constant 0 : index
    %53 = vector.load %arg8[%52, %c0_18] : memref<16x32xf32, #tpu.memory_space<vmem>>, vector<1x32xf32>
    tpu.vector_store %arg8[%52, %c0_18], %51 {strides = array<i32>} : memref<16x32xf32, #tpu.memory_space<vmem>>, vector<1x32xf32>,
    %c2_i32 = arith.constant 2 : i32
    %54 = arith.index_cast %c2_i32 : i32 to index
    %c0_19 = arith.constant 0 : index
    %55 = vector.load %arg7[%54, %c0_19] : memref<16x128xf32, #tpu.memory_space<vmem>>, vector<1x128xf32>
    %cst_20 = arith.constant dense<0.000000e+00> : vector<1x128xf32>
    %56 = tpu.matmul %51, %7, %cst_20 {dimension_numbers = #tpu.dot_dimension_numbers<[1], [0], [0], [1], [0, 0, 1, 1], [], []>} : vector<1x32xf32>, vector<32x128xf32>, vector<1x128xf32> -> vector<1x128xf32>
    %57 = arith.addf %55, %56 : vector<1x128xf32>
    %58 = vector.extract_strided_slice %57 {offsets = [0, 0], sizes = [1, 96], strides = [1, 1]} : vector<1x128xf32> to vector<1x96xf32>
    %59 = arith.negf %58 : vector<1x96xf32>
    %60 = math.exp %59 : vector<1x96xf32>
    %cst_21 = arith.constant 1.000000e+00 : f32
    %61 = vector.broadcast %cst_21 : f32 to vector<1x96xf32>
    %62 = arith.addf %61, %60 : vector<1x96xf32>
    %63 = arith.divf %61, %62 : vector<1x96xf32>
    %64 = vector.extract_strided_slice %63 {offsets = [0, 0], sizes = [1, 32], strides = [1, 1]} : vector<1x96xf32> to vector<1x32xf32>
    %65 = vector.extract_strided_slice %63 {offsets = [0, 32], sizes = [1, 32], strides = [1, 1]} : vector<1x96xf32> to vector<1x32xf32>
    %66 = vector.extract_strided_slice %63 {offsets = [0, 64], sizes = [1, 32], strides = [1, 1]} : vector<1x96xf32> to vector<1x32xf32>
    %67 = vector.extract_strided_slice %57 {offsets = [0, 96], sizes = [1, 32], strides = [1, 1]} : vector<1x128xf32> to vector<1x32xf32>
    %68 = math.tanh %67 : vector<1x32xf32>
    %69 = arith.mulf %65, %49 : vector<1x32xf32>
    %70 = arith.mulf %64, %68 : vector<1x32xf32>
    %71 = arith.addf %69, %70 : vector<1x32xf32>
    %72 = math.tanh %71 : vector<1x32xf32>
    %73 = arith.mulf %66, %72 : vector<1x32xf32>
    %74 = arith.index_cast %c2_i32 : i32 to index
    %c0_22 = arith.constant 0 : index
    %75 = vector.load %arg8[%74, %c0_22] : memref<16x32xf32, #tpu.memory_space<vmem>>, vector<1x32xf32>
    tpu.vector_store %arg8[%74, %c0_22], %73 {strides = array<i32>} : memref<16x32xf32, #tpu.memory_space<vmem>>, vector<1x32xf32>,
    %c3_i32 = arith.constant 3 : i32
    %76 = arith.index_cast %c3_i32 : i32 to index
    %c0_23 = arith.constant 0 : index
    %77 = vector.load %arg7[%76, %c0_23] : memref<16x128xf32, #tpu.memory_space<vmem>>, vector<1x128xf32>
    %cst_24 = arith.constant dense<0.000000e+00> : vector<1x128xf32>
    %78 = tpu.matmul %73, %7, %cst_24 {dimension_numbers = #tpu.dot_dimension_numbers<[1], [0], [0], [1], [0, 0, 1, 1], [], []>} : vector<1x32xf32>, vector<32x128xf32>, vector<1x128xf32> -> vector<1x128xf32>
    %79 = arith.addf %77, %78 : vector<1x128xf32>
    %80 = vector.extract_strided_slice %79 {offsets = [0, 0], sizes = [1, 96], strides = [1, 1]} : vector<1x128xf32> to vector<1x96xf32>
    %81 = arith.negf %80 : vector<1x96xf32>
    %82 = math.exp %81 : vector<1x96xf32>
    %cst_25 = arith.constant 1.000000e+00 : f32
    %83 = vector.broadcast %cst_25 : f32 to vector<1x96xf32>
    %84 = arith.addf %83, %82 : vector<1x96xf32>
    %85 = arith.divf %83, %84 : vector<1x96xf32>
    %86 = vector.extract_strided_slice %85 {offsets = [0, 0], sizes = [1, 32], strides = [1, 1]} : vector<1x96xf32> to vector<1x32xf32>
    %87 = vector.extract_strided_slice %85 {offsets = [0, 32], sizes = [1, 32], strides = [1, 1]} : vector<1x96xf32> to vector<1x32xf32>
    %88 = vector.extract_strided_slice %85 {offsets = [0, 64], sizes = [1, 32], strides = [1, 1]} : vector<1x96xf32> to vector<1x32xf32>
    %89 = vector.extract_strided_slice %79 {offsets = [0, 96], sizes = [1, 32], strides = [1, 1]} : vector<1x128xf32> to vector<1x32xf32>
    %90 = math.tanh %89 : vector<1x32xf32>
    %91 = arith.mulf %87, %71 : vector<1x32xf32>
    %92 = arith.mulf %86, %90 : vector<1x32xf32>
    %93 = arith.addf %91, %92 : vector<1x32xf32>
    %94 = math.tanh %93 : vector<1x32xf32>
    %95 = arith.mulf %88, %94 : vector<1x32xf32>
    %96 = arith.index_cast %c3_i32 : i32 to index
    %c0_26 = arith.constant 0 : index
    %97 = vector.load %arg8[%96, %c0_26] : memref<16x32xf32, #tpu.memory_space<vmem>>, vector<1x32xf32>
    tpu.vector_store %arg8[%96, %c0_26], %95 {strides = array<i32>} : memref<16x32xf32, #tpu.memory_space<vmem>>, vector<1x32xf32>,
    %c4_i32 = arith.constant 4 : i32
    %98 = arith.index_cast %c4_i32 : i32 to index
    %c0_27 = arith.constant 0 : index
    %99 = vector.load %arg7[%98, %c0_27] : memref<16x128xf32, #tpu.memory_space<vmem>>, vector<1x128xf32>
    %cst_28 = arith.constant dense<0.000000e+00> : vector<1x128xf32>
    %100 = tpu.matmul %95, %7, %cst_28 {dimension_numbers = #tpu.dot_dimension_numbers<[1], [0], [0], [1], [0, 0, 1, 1], [], []>} : vector<1x32xf32>, vector<32x128xf32>, vector<1x128xf32> -> vector<1x128xf32>
    %101 = arith.addf %99, %100 : vector<1x128xf32>
    %102 = vector.extract_strided_slice %101 {offsets = [0, 0], sizes = [1, 96], strides = [1, 1]} : vector<1x128xf32> to vector<1x96xf32>
    %103 = arith.negf %102 : vector<1x96xf32>
    %104 = math.exp %103 : vector<1x96xf32>
    %cst_29 = arith.constant 1.000000e+00 : f32
    %105 = vector.broadcast %cst_29 : f32 to vector<1x96xf32>
    %106 = arith.addf %105, %104 : vector<1x96xf32>
    %107 = arith.divf %105, %106 : vector<1x96xf32>
    %108 = vector.extract_strided_slice %107 {offsets = [0, 0], sizes = [1, 32], strides = [1, 1]} : vector<1x96xf32> to vector<1x32xf32>
    %109 = vector.extract_strided_slice %107 {offsets = [0, 32], sizes = [1, 32], strides = [1, 1]} : vector<1x96xf32> to vector<1x32xf32>
    %110 = vector.extract_strided_slice %107 {offsets = [0, 64], sizes = [1, 32], strides = [1, 1]} : vector<1x96xf32> to vector<1x32xf32>
    %111 = vector.extract_strided_slice %101 {offsets = [0, 96], sizes = [1, 32], strides = [1, 1]} : vector<1x128xf32> to vector<1x32xf32>
    %112 = math.tanh %111 : vector<1x32xf32>
    %113 = arith.mulf %109, %93 : vector<1x32xf32>
    %114 = arith.mulf %108, %112 : vector<1x32xf32>
    %115 = arith.addf %113, %114 : vector<1x32xf32>
    %116 = math.tanh %115 : vector<1x32xf32>
    %117 = arith.mulf %110, %116 : vector<1x32xf32>
    %118 = arith.index_cast %c4_i32 : i32 to index
    %c0_30 = arith.constant 0 : index
    %119 = vector.load %arg8[%118, %c0_30] : memref<16x32xf32, #tpu.memory_space<vmem>>, vector<1x32xf32>
    tpu.vector_store %arg8[%118, %c0_30], %117 {strides = array<i32>} : memref<16x32xf32, #tpu.memory_space<vmem>>, vector<1x32xf32>,
    %c5_i32 = arith.constant 5 : i32
    %120 = arith.index_cast %c5_i32 : i32 to index
    %c0_31 = arith.constant 0 : index
    %121 = vector.load %arg7[%120, %c0_31] : memref<16x128xf32, #tpu.memory_space<vmem>>, vector<1x128xf32>
    %cst_32 = arith.constant dense<0.000000e+00> : vector<1x128xf32>
    %122 = tpu.matmul %117, %7, %cst_32 {dimension_numbers = #tpu.dot_dimension_numbers<[1], [0], [0], [1], [0, 0, 1, 1], [], []>} : vector<1x32xf32>, vector<32x128xf32>, vector<1x128xf32> -> vector<1x128xf32>
    %123 = arith.addf %121, %122 : vector<1x128xf32>
    %124 = vector.extract_strided_slice %123 {offsets = [0, 0], sizes = [1, 96], strides = [1, 1]} : vector<1x128xf32> to vector<1x96xf32>
    %125 = arith.negf %124 : vector<1x96xf32>
    %126 = math.exp %125 : vector<1x96xf32>
    %cst_33 = arith.constant 1.000000e+00 : f32
    %127 = vector.broadcast %cst_33 : f32 to vector<1x96xf32>
    %128 = arith.addf %127, %126 : vector<1x96xf32>
    %129 = arith.divf %127, %128 : vector<1x96xf32>
    %130 = vector.extract_strided_slice %129 {offsets = [0, 0], sizes = [1, 32], strides = [1, 1]} : vector<1x96xf32> to vector<1x32xf32>
    %131 = vector.extract_strided_slice %129 {offsets = [0, 32], sizes = [1, 32], strides = [1, 1]} : vector<1x96xf32> to vector<1x32xf32>
    %132 = vector.extract_strided_slice %129 {offsets = [0, 64], sizes = [1, 32], strides = [1, 1]} : vector<1x96xf32> to vector<1x32xf32>
    %133 = vector.extract_strided_slice %123 {offsets = [0, 96], sizes = [1, 32], strides = [1, 1]} : vector<1x128xf32> to vector<1x32xf32>
    %134 = math.tanh %133 : vector<1x32xf32>
    %135 = arith.mulf %131, %115 : vector<1x32xf32>
    %136 = arith.mulf %130, %134 : vector<1x32xf32>
    %137 = arith.addf %135, %136 : vector<1x32xf32>
    %138 = math.tanh %137 : vector<1x32xf32>
    %139 = arith.mulf %132, %138 : vector<1x32xf32>
    %140 = arith.index_cast %c5_i32 : i32 to index
    %c0_34 = arith.constant 0 : index
    %141 = vector.load %arg8[%140, %c0_34] : memref<16x32xf32, #tpu.memory_space<vmem>>, vector<1x32xf32>
    tpu.vector_store %arg8[%140, %c0_34], %139 {strides = array<i32>} : memref<16x32xf32, #tpu.memory_space<vmem>>, vector<1x32xf32>,
    %c6_i32 = arith.constant 6 : i32
    %142 = arith.index_cast %c6_i32 : i32 to index
    %c0_35 = arith.constant 0 : index
    %143 = vector.load %arg7[%142, %c0_35] : memref<16x128xf32, #tpu.memory_space<vmem>>, vector<1x128xf32>
    %cst_36 = arith.constant dense<0.000000e+00> : vector<1x128xf32>
    %144 = tpu.matmul %139, %7, %cst_36 {dimension_numbers = #tpu.dot_dimension_numbers<[1], [0], [0], [1], [0, 0, 1, 1], [], []>} : vector<1x32xf32>, vector<32x128xf32>, vector<1x128xf32> -> vector<1x128xf32>
    %145 = arith.addf %143, %144 : vector<1x128xf32>
    %146 = vector.extract_strided_slice %145 {offsets = [0, 0], sizes = [1, 96], strides = [1, 1]} : vector<1x128xf32> to vector<1x96xf32>
    %147 = arith.negf %146 : vector<1x96xf32>
    %148 = math.exp %147 : vector<1x96xf32>
    %cst_37 = arith.constant 1.000000e+00 : f32
    %149 = vector.broadcast %cst_37 : f32 to vector<1x96xf32>
    %150 = arith.addf %149, %148 : vector<1x96xf32>
    %151 = arith.divf %149, %150 : vector<1x96xf32>
    %152 = vector.extract_strided_slice %151 {offsets = [0, 0], sizes = [1, 32], strides = [1, 1]} : vector<1x96xf32> to vector<1x32xf32>
    %153 = vector.extract_strided_slice %151 {offsets = [0, 32], sizes = [1, 32], strides = [1, 1]} : vector<1x96xf32> to vector<1x32xf32>
    %154 = vector.extract_strided_slice %151 {offsets = [0, 64], sizes = [1, 32], strides = [1, 1]} : vector<1x96xf32> to vector<1x32xf32>
    %155 = vector.extract_strided_slice %145 {offsets = [0, 96], sizes = [1, 32], strides = [1, 1]} : vector<1x128xf32> to vector<1x32xf32>
    %156 = math.tanh %155 : vector<1x32xf32>
    %157 = arith.mulf %153, %137 : vector<1x32xf32>
    %158 = arith.mulf %152, %156 : vector<1x32xf32>
    %159 = arith.addf %157, %158 : vector<1x32xf32>
    %160 = math.tanh %159 : vector<1x32xf32>
    %161 = arith.mulf %154, %160 : vector<1x32xf32>
    %162 = arith.index_cast %c6_i32 : i32 to index
    %c0_38 = arith.constant 0 : index
    %163 = vector.load %arg8[%162, %c0_38] : memref<16x32xf32, #tpu.memory_space<vmem>>, vector<1x32xf32>
    tpu.vector_store %arg8[%162, %c0_38], %161 {strides = array<i32>} : memref<16x32xf32, #tpu.memory_space<vmem>>, vector<1x32xf32>,
    %c7_i32 = arith.constant 7 : i32
    %164 = arith.index_cast %c7_i32 : i32 to index
    %c0_39 = arith.constant 0 : index
    %165 = vector.load %arg7[%164, %c0_39] : memref<16x128xf32, #tpu.memory_space<vmem>>, vector<1x128xf32>
    %cst_40 = arith.constant dense<0.000000e+00> : vector<1x128xf32>
    %166 = tpu.matmul %161, %7, %cst_40 {dimension_numbers = #tpu.dot_dimension_numbers<[1], [0], [0], [1], [0, 0, 1, 1], [], []>} : vector<1x32xf32>, vector<32x128xf32>, vector<1x128xf32> -> vector<1x128xf32>
    %167 = arith.addf %165, %166 : vector<1x128xf32>
    %168 = vector.extract_strided_slice %167 {offsets = [0, 0], sizes = [1, 96], strides = [1, 1]} : vector<1x128xf32> to vector<1x96xf32>
    %169 = arith.negf %168 : vector<1x96xf32>
    %170 = math.exp %169 : vector<1x96xf32>
    %cst_41 = arith.constant 1.000000e+00 : f32
    %171 = vector.broadcast %cst_41 : f32 to vector<1x96xf32>
    %172 = arith.addf %171, %170 : vector<1x96xf32>
    %173 = arith.divf %171, %172 : vector<1x96xf32>
    %174 = vector.extract_strided_slice %173 {offsets = [0, 0], sizes = [1, 32], strides = [1, 1]} : vector<1x96xf32> to vector<1x32xf32>
    %175 = vector.extract_strided_slice %173 {offsets = [0, 32], sizes = [1, 32], strides = [1, 1]} : vector<1x96xf32> to vector<1x32xf32>
    %176 = vector.extract_strided_slice %173 {offsets = [0, 64], sizes = [1, 32], strides = [1, 1]} : vector<1x96xf32> to vector<1x32xf32>
    %177 = vector.extract_strided_slice %167 {offsets = [0, 96], sizes = [1, 32], strides = [1, 1]} : vector<1x128xf32> to vector<1x32xf32>
    %178 = math.tanh %177 : vector<1x32xf32>
    %179 = arith.mulf %175, %159 : vector<1x32xf32>
    %180 = arith.mulf %174, %178 : vector<1x32xf32>
    %181 = arith.addf %179, %180 : vector<1x32xf32>
    %182 = math.tanh %181 : vector<1x32xf32>
    %183 = arith.mulf %176, %182 : vector<1x32xf32>
    %184 = arith.index_cast %c7_i32 : i32 to index
    %c0_42 = arith.constant 0 : index
    %185 = vector.load %arg8[%184, %c0_42] : memref<16x32xf32, #tpu.memory_space<vmem>>, vector<1x32xf32>
    tpu.vector_store %arg8[%184, %c0_42], %183 {strides = array<i32>} : memref<16x32xf32, #tpu.memory_space<vmem>>, vector<1x32xf32>,
    %c8_i32 = arith.constant 8 : i32
    %186 = arith.index_cast %c8_i32 : i32 to index
    %c0_43 = arith.constant 0 : index
    %187 = vector.load %arg7[%186, %c0_43] : memref<16x128xf32, #tpu.memory_space<vmem>>, vector<1x128xf32>
    %cst_44 = arith.constant dense<0.000000e+00> : vector<1x128xf32>
    %188 = tpu.matmul %183, %7, %cst_44 {dimension_numbers = #tpu.dot_dimension_numbers<[1], [0], [0], [1], [0, 0, 1, 1], [], []>} : vector<1x32xf32>, vector<32x128xf32>, vector<1x128xf32> -> vector<1x128xf32>
    %189 = arith.addf %187, %188 : vector<1x128xf32>
    %190 = vector.extract_strided_slice %189 {offsets = [0, 0], sizes = [1, 96], strides = [1, 1]} : vector<1x128xf32> to vector<1x96xf32>
    %191 = arith.negf %190 : vector<1x96xf32>
    %192 = math.exp %191 : vector<1x96xf32>
    %cst_45 = arith.constant 1.000000e+00 : f32
    %193 = vector.broadcast %cst_45 : f32 to vector<1x96xf32>
    %194 = arith.addf %193, %192 : vector<1x96xf32>
    %195 = arith.divf %193, %194 : vector<1x96xf32>
    %196 = vector.extract_strided_slice %195 {offsets = [0, 0], sizes = [1, 32], strides = [1, 1]} : vector<1x96xf32> to vector<1x32xf32>
    %197 = vector.extract_strided_slice %195 {offsets = [0, 32], sizes = [1, 32], strides = [1, 1]} : vector<1x96xf32> to vector<1x32xf32>
    %198 = vector.extract_strided_slice %195 {offsets = [0, 64], sizes = [1, 32], strides = [1, 1]} : vector<1x96xf32> to vector<1x32xf32>
    %199 = vector.extract_strided_slice %189 {offsets = [0, 96], sizes = [1, 32], strides = [1, 1]} : vector<1x128xf32> to vector<1x32xf32>
    %200 = math.tanh %199 : vector<1x32xf32>
    %201 = arith.mulf %197, %181 : vector<1x32xf32>
    %202 = arith.mulf %196, %200 : vector<1x32xf32>
    %203 = arith.addf %201, %202 : vector<1x32xf32>
    %204 = math.tanh %203 : vector<1x32xf32>
    %205 = arith.mulf %198, %204 : vector<1x32xf32>
    %206 = arith.index_cast %c8_i32 : i32 to index
    %c0_46 = arith.constant 0 : index
    %207 = vector.load %arg8[%206, %c0_46] : memref<16x32xf32, #tpu.memory_space<vmem>>, vector<1x32xf32>
    tpu.vector_store %arg8[%206, %c0_46], %205 {strides = array<i32>} : memref<16x32xf32, #tpu.memory_space<vmem>>, vector<1x32xf32>,
    %c9_i32 = arith.constant 9 : i32
    %208 = arith.index_cast %c9_i32 : i32 to index
    %c0_47 = arith.constant 0 : index
    %209 = vector.load %arg7[%208, %c0_47] : memref<16x128xf32, #tpu.memory_space<vmem>>, vector<1x128xf32>
    %cst_48 = arith.constant dense<0.000000e+00> : vector<1x128xf32>
    %210 = tpu.matmul %205, %7, %cst_48 {dimension_numbers = #tpu.dot_dimension_numbers<[1], [0], [0], [1], [0, 0, 1, 1], [], []>} : vector<1x32xf32>, vector<32x128xf32>, vector<1x128xf32> -> vector<1x128xf32>
    %211 = arith.addf %209, %210 : vector<1x128xf32>
    %212 = vector.extract_strided_slice %211 {offsets = [0, 0], sizes = [1, 96], strides = [1, 1]} : vector<1x128xf32> to vector<1x96xf32>
    %213 = arith.negf %212 : vector<1x96xf32>
    %214 = math.exp %213 : vector<1x96xf32>
    %cst_49 = arith.constant 1.000000e+00 : f32
    %215 = vector.broadcast %cst_49 : f32 to vector<1x96xf32>
    %216 = arith.addf %215, %214 : vector<1x96xf32>
    %217 = arith.divf %215, %216 : vector<1x96xf32>
    %218 = vector.extract_strided_slice %217 {offsets = [0, 0], sizes = [1, 32], strides = [1, 1]} : vector<1x96xf32> to vector<1x32xf32>
    %219 = vector.extract_strided_slice %217 {offsets = [0, 32], sizes = [1, 32], strides = [1, 1]} : vector<1x96xf32> to vector<1x32xf32>
    %220 = vector.extract_strided_slice %217 {offsets = [0, 64], sizes = [1, 32], strides = [1, 1]} : vector<1x96xf32> to vector<1x32xf32>
    %221 = vector.extract_strided_slice %211 {offsets = [0, 96], sizes = [1, 32], strides = [1, 1]} : vector<1x128xf32> to vector<1x32xf32>
    %222 = math.tanh %221 : vector<1x32xf32>
    %223 = arith.mulf %219, %203 : vector<1x32xf32>
    %224 = arith.mulf %218, %222 : vector<1x32xf32>
    %225 = arith.addf %223, %224 : vector<1x32xf32>
    %226 = math.tanh %225 : vector<1x32xf32>
    %227 = arith.mulf %220, %226 : vector<1x32xf32>
    %228 = arith.index_cast %c9_i32 : i32 to index
    %c0_50 = arith.constant 0 : index
    %229 = vector.load %arg8[%228, %c0_50] : memref<16x32xf32, #tpu.memory_space<vmem>>, vector<1x32xf32>
    tpu.vector_store %arg8[%228, %c0_50], %227 {strides = array<i32>} : memref<16x32xf32, #tpu.memory_space<vmem>>, vector<1x32xf32>,
    %c10_i32 = arith.constant 10 : i32
    %230 = arith.index_cast %c10_i32 : i32 to index
    %c0_51 = arith.constant 0 : index
    %231 = vector.load %arg7[%230, %c0_51] : memref<16x128xf32, #tpu.memory_space<vmem>>, vector<1x128xf32>
    %cst_52 = arith.constant dense<0.000000e+00> : vector<1x128xf32>
    %232 = tpu.matmul %227, %7, %cst_52 {dimension_numbers = #tpu.dot_dimension_numbers<[1], [0], [0], [1], [0, 0, 1, 1], [], []>} : vector<1x32xf32>, vector<32x128xf32>, vector<1x128xf32> -> vector<1x128xf32>
    %233 = arith.addf %231, %232 : vector<1x128xf32>
    %234 = vector.extract_strided_slice %233 {offsets = [0, 0], sizes = [1, 96], strides = [1, 1]} : vector<1x128xf32> to vector<1x96xf32>
    %235 = arith.negf %234 : vector<1x96xf32>
    %236 = math.exp %235 : vector<1x96xf32>
    %cst_53 = arith.constant 1.000000e+00 : f32
    %237 = vector.broadcast %cst_53 : f32 to vector<1x96xf32>
    %238 = arith.addf %237, %236 : vector<1x96xf32>
    %239 = arith.divf %237, %238 : vector<1x96xf32>
    %240 = vector.extract_strided_slice %239 {offsets = [0, 0], sizes = [1, 32], strides = [1, 1]} : vector<1x96xf32> to vector<1x32xf32>
    %241 = vector.extract_strided_slice %239 {offsets = [0, 32], sizes = [1, 32], strides = [1, 1]} : vector<1x96xf32> to vector<1x32xf32>
    %242 = vector.extract_strided_slice %239 {offsets = [0, 64], sizes = [1, 32], strides = [1, 1]} : vector<1x96xf32> to vector<1x32xf32>
    %243 = vector.extract_strided_slice %233 {offsets = [0, 96], sizes = [1, 32], strides = [1, 1]} : vector<1x128xf32> to vector<1x32xf32>
    %244 = math.tanh %243 : vector<1x32xf32>
    %245 = arith.mulf %241, %225 : vector<1x32xf32>
    %246 = arith.mulf %240, %244 : vector<1x32xf32>
    %247 = arith.addf %245, %246 : vector<1x32xf32>
    %248 = math.tanh %247 : vector<1x32xf32>
    %249 = arith.mulf %242, %248 : vector<1x32xf32>
    %250 = arith.index_cast %c10_i32 : i32 to index
    %c0_54 = arith.constant 0 : index
    %251 = vector.load %arg8[%250, %c0_54] : memref<16x32xf32, #tpu.memory_space<vmem>>, vector<1x32xf32>
    tpu.vector_store %arg8[%250, %c0_54], %249 {strides = array<i32>} : memref<16x32xf32, #tpu.memory_space<vmem>>, vector<1x32xf32>,
    %c11_i32 = arith.constant 11 : i32
    %252 = arith.index_cast %c11_i32 : i32 to index
    %c0_55 = arith.constant 0 : index
    %253 = vector.load %arg7[%252, %c0_55] : memref<16x128xf32, #tpu.memory_space<vmem>>, vector<1x128xf32>
    %cst_56 = arith.constant dense<0.000000e+00> : vector<1x128xf32>
    %254 = tpu.matmul %249, %7, %cst_56 {dimension_numbers = #tpu.dot_dimension_numbers<[1], [0], [0], [1], [0, 0, 1, 1], [], []>} : vector<1x32xf32>, vector<32x128xf32>, vector<1x128xf32> -> vector<1x128xf32>
    %255 = arith.addf %253, %254 : vector<1x128xf32>
    %256 = vector.extract_strided_slice %255 {offsets = [0, 0], sizes = [1, 96], strides = [1, 1]} : vector<1x128xf32> to vector<1x96xf32>
    %257 = arith.negf %256 : vector<1x96xf32>
    %258 = math.exp %257 : vector<1x96xf32>
    %cst_57 = arith.constant 1.000000e+00 : f32
    %259 = vector.broadcast %cst_57 : f32 to vector<1x96xf32>
    %260 = arith.addf %259, %258 : vector<1x96xf32>
    %261 = arith.divf %259, %260 : vector<1x96xf32>
    %262 = vector.extract_strided_slice %261 {offsets = [0, 0], sizes = [1, 32], strides = [1, 1]} : vector<1x96xf32> to vector<1x32xf32>
    %263 = vector.extract_strided_slice %261 {offsets = [0, 32], sizes = [1, 32], strides = [1, 1]} : vector<1x96xf32> to vector<1x32xf32>
    %264 = vector.extract_strided_slice %261 {offsets = [0, 64], sizes = [1, 32], strides = [1, 1]} : vector<1x96xf32> to vector<1x32xf32>
    %265 = vector.extract_strided_slice %255 {offsets = [0, 96], sizes = [1, 32], strides = [1, 1]} : vector<1x128xf32> to vector<1x32xf32>
    %266 = math.tanh %265 : vector<1x32xf32>
    %267 = arith.mulf %263, %247 : vector<1x32xf32>
    %268 = arith.mulf %262, %266 : vector<1x32xf32>
    %269 = arith.addf %267, %268 : vector<1x32xf32>
    %270 = math.tanh %269 : vector<1x32xf32>
    %271 = arith.mulf %264, %270 : vector<1x32xf32>
    %272 = arith.index_cast %c11_i32 : i32 to index
    %c0_58 = arith.constant 0 : index
    %273 = vector.load %arg8[%272, %c0_58] : memref<16x32xf32, #tpu.memory_space<vmem>>, vector<1x32xf32>
    tpu.vector_store %arg8[%272, %c0_58], %271 {strides = array<i32>} : memref<16x32xf32, #tpu.memory_space<vmem>>, vector<1x32xf32>,
    %c12_i32 = arith.constant 12 : i32
    %274 = arith.index_cast %c12_i32 : i32 to index
    %c0_59 = arith.constant 0 : index
    %275 = vector.load %arg7[%274, %c0_59] : memref<16x128xf32, #tpu.memory_space<vmem>>, vector<1x128xf32>
    %cst_60 = arith.constant dense<0.000000e+00> : vector<1x128xf32>
    %276 = tpu.matmul %271, %7, %cst_60 {dimension_numbers = #tpu.dot_dimension_numbers<[1], [0], [0], [1], [0, 0, 1, 1], [], []>} : vector<1x32xf32>, vector<32x128xf32>, vector<1x128xf32> -> vector<1x128xf32>
    %277 = arith.addf %275, %276 : vector<1x128xf32>
    %278 = vector.extract_strided_slice %277 {offsets = [0, 0], sizes = [1, 96], strides = [1, 1]} : vector<1x128xf32> to vector<1x96xf32>
    %279 = arith.negf %278 : vector<1x96xf32>
    %280 = math.exp %279 : vector<1x96xf32>
    %cst_61 = arith.constant 1.000000e+00 : f32
    %281 = vector.broadcast %cst_61 : f32 to vector<1x96xf32>
    %282 = arith.addf %281, %280 : vector<1x96xf32>
    %283 = arith.divf %281, %282 : vector<1x96xf32>
    %284 = vector.extract_strided_slice %283 {offsets = [0, 0], sizes = [1, 32], strides = [1, 1]} : vector<1x96xf32> to vector<1x32xf32>
    %285 = vector.extract_strided_slice %283 {offsets = [0, 32], sizes = [1, 32], strides = [1, 1]} : vector<1x96xf32> to vector<1x32xf32>
    %286 = vector.extract_strided_slice %283 {offsets = [0, 64], sizes = [1, 32], strides = [1, 1]} : vector<1x96xf32> to vector<1x32xf32>
    %287 = vector.extract_strided_slice %277 {offsets = [0, 96], sizes = [1, 32], strides = [1, 1]} : vector<1x128xf32> to vector<1x32xf32>
    %288 = math.tanh %287 : vector<1x32xf32>
    %289 = arith.mulf %285, %269 : vector<1x32xf32>
    %290 = arith.mulf %284, %288 : vector<1x32xf32>
    %291 = arith.addf %289, %290 : vector<1x32xf32>
    %292 = math.tanh %291 : vector<1x32xf32>
    %293 = arith.mulf %286, %292 : vector<1x32xf32>
    %294 = arith.index_cast %c12_i32 : i32 to index
    %c0_62 = arith.constant 0 : index
    %295 = vector.load %arg8[%294, %c0_62] : memref<16x32xf32, #tpu.memory_space<vmem>>, vector<1x32xf32>
    tpu.vector_store %arg8[%294, %c0_62], %293 {strides = array<i32>} : memref<16x32xf32, #tpu.memory_space<vmem>>, vector<1x32xf32>,
    %c13_i32 = arith.constant 13 : i32
    %296 = arith.index_cast %c13_i32 : i32 to index
    %c0_63 = arith.constant 0 : index
    %297 = vector.load %arg7[%296, %c0_63] : memref<16x128xf32, #tpu.memory_space<vmem>>, vector<1x128xf32>
    %cst_64 = arith.constant dense<0.000000e+00> : vector<1x128xf32>
    %298 = tpu.matmul %293, %7, %cst_64 {dimension_numbers = #tpu.dot_dimension_numbers<[1], [0], [0], [1], [0, 0, 1, 1], [], []>} : vector<1x32xf32>, vector<32x128xf32>, vector<1x128xf32> -> vector<1x128xf32>
    %299 = arith.addf %297, %298 : vector<1x128xf32>
    %300 = vector.extract_strided_slice %299 {offsets = [0, 0], sizes = [1, 96], strides = [1, 1]} : vector<1x128xf32> to vector<1x96xf32>
    %301 = arith.negf %300 : vector<1x96xf32>
    %302 = math.exp %301 : vector<1x96xf32>
    %cst_65 = arith.constant 1.000000e+00 : f32
    %303 = vector.broadcast %cst_65 : f32 to vector<1x96xf32>
    %304 = arith.addf %303, %302 : vector<1x96xf32>
    %305 = arith.divf %303, %304 : vector<1x96xf32>
    %306 = vector.extract_strided_slice %305 {offsets = [0, 0], sizes = [1, 32], strides = [1, 1]} : vector<1x96xf32> to vector<1x32xf32>
    %307 = vector.extract_strided_slice %305 {offsets = [0, 32], sizes = [1, 32], strides = [1, 1]} : vector<1x96xf32> to vector<1x32xf32>
    %308 = vector.extract_strided_slice %305 {offsets = [0, 64], sizes = [1, 32], strides = [1, 1]} : vector<1x96xf32> to vector<1x32xf32>
    %309 = vector.extract_strided_slice %299 {offsets = [0, 96], sizes = [1, 32], strides = [1, 1]} : vector<1x128xf32> to vector<1x32xf32>
    %310 = math.tanh %309 : vector<1x32xf32>
    %311 = arith.mulf %307, %291 : vector<1x32xf32>
    %312 = arith.mulf %306, %310 : vector<1x32xf32>
    %313 = arith.addf %311, %312 : vector<1x32xf32>
    %314 = math.tanh %313 : vector<1x32xf32>
    %315 = arith.mulf %308, %314 : vector<1x32xf32>
    %316 = arith.index_cast %c13_i32 : i32 to index
    %c0_66 = arith.constant 0 : index
    %317 = vector.load %arg8[%316, %c0_66] : memref<16x32xf32, #tpu.memory_space<vmem>>, vector<1x32xf32>
    tpu.vector_store %arg8[%316, %c0_66], %315 {strides = array<i32>} : memref<16x32xf32, #tpu.memory_space<vmem>>, vector<1x32xf32>,
    %c14_i32 = arith.constant 14 : i32
    %318 = arith.index_cast %c14_i32 : i32 to index
    %c0_67 = arith.constant 0 : index
    %319 = vector.load %arg7[%318, %c0_67] : memref<16x128xf32, #tpu.memory_space<vmem>>, vector<1x128xf32>
    %cst_68 = arith.constant dense<0.000000e+00> : vector<1x128xf32>
    %320 = tpu.matmul %315, %7, %cst_68 {dimension_numbers = #tpu.dot_dimension_numbers<[1], [0], [0], [1], [0, 0, 1, 1], [], []>} : vector<1x32xf32>, vector<32x128xf32>, vector<1x128xf32> -> vector<1x128xf32>
    %321 = arith.addf %319, %320 : vector<1x128xf32>
    %322 = vector.extract_strided_slice %321 {offsets = [0, 0], sizes = [1, 96], strides = [1, 1]} : vector<1x128xf32> to vector<1x96xf32>
    %323 = arith.negf %322 : vector<1x96xf32>
    %324 = math.exp %323 : vector<1x96xf32>
    %cst_69 = arith.constant 1.000000e+00 : f32
    %325 = vector.broadcast %cst_69 : f32 to vector<1x96xf32>
    %326 = arith.addf %325, %324 : vector<1x96xf32>
    %327 = arith.divf %325, %326 : vector<1x96xf32>
    %328 = vector.extract_strided_slice %327 {offsets = [0, 0], sizes = [1, 32], strides = [1, 1]} : vector<1x96xf32> to vector<1x32xf32>
    %329 = vector.extract_strided_slice %327 {offsets = [0, 32], sizes = [1, 32], strides = [1, 1]} : vector<1x96xf32> to vector<1x32xf32>
    %330 = vector.extract_strided_slice %327 {offsets = [0, 64], sizes = [1, 32], strides = [1, 1]} : vector<1x96xf32> to vector<1x32xf32>
    %331 = vector.extract_strided_slice %321 {offsets = [0, 96], sizes = [1, 32], strides = [1, 1]} : vector<1x128xf32> to vector<1x32xf32>
    %332 = math.tanh %331 : vector<1x32xf32>
    %333 = arith.mulf %329, %313 : vector<1x32xf32>
    %334 = arith.mulf %328, %332 : vector<1x32xf32>
    %335 = arith.addf %333, %334 : vector<1x32xf32>
    %336 = math.tanh %335 : vector<1x32xf32>
    %337 = arith.mulf %330, %336 : vector<1x32xf32>
    %338 = arith.index_cast %c14_i32 : i32 to index
    %c0_70 = arith.constant 0 : index
    %339 = vector.load %arg8[%338, %c0_70] : memref<16x32xf32, #tpu.memory_space<vmem>>, vector<1x32xf32>
    tpu.vector_store %arg8[%338, %c0_70], %337 {strides = array<i32>} : memref<16x32xf32, #tpu.memory_space<vmem>>, vector<1x32xf32>,
    %c15_i32 = arith.constant 15 : i32
    %340 = arith.index_cast %c15_i32 : i32 to index
    %c0_71 = arith.constant 0 : index
    %341 = vector.load %arg7[%340, %c0_71] : memref<16x128xf32, #tpu.memory_space<vmem>>, vector<1x128xf32>
    %cst_72 = arith.constant dense<0.000000e+00> : vector<1x128xf32>
    %342 = tpu.matmul %337, %7, %cst_72 {dimension_numbers = #tpu.dot_dimension_numbers<[1], [0], [0], [1], [0, 0, 1, 1], [], []>} : vector<1x32xf32>, vector<32x128xf32>, vector<1x128xf32> -> vector<1x128xf32>
    %343 = arith.addf %341, %342 : vector<1x128xf32>
    %344 = vector.extract_strided_slice %343 {offsets = [0, 0], sizes = [1, 96], strides = [1, 1]} : vector<1x128xf32> to vector<1x96xf32>
    %345 = arith.negf %344 : vector<1x96xf32>
    %346 = math.exp %345 : vector<1x96xf32>
    %cst_73 = arith.constant 1.000000e+00 : f32
    %347 = vector.broadcast %cst_73 : f32 to vector<1x96xf32>
    %348 = arith.addf %347, %346 : vector<1x96xf32>
    %349 = arith.divf %347, %348 : vector<1x96xf32>
    %350 = vector.extract_strided_slice %349 {offsets = [0, 0], sizes = [1, 32], strides = [1, 1]} : vector<1x96xf32> to vector<1x32xf32>
    %351 = vector.extract_strided_slice %349 {offsets = [0, 32], sizes = [1, 32], strides = [1, 1]} : vector<1x96xf32> to vector<1x32xf32>
    %352 = vector.extract_strided_slice %349 {offsets = [0, 64], sizes = [1, 32], strides = [1, 1]} : vector<1x96xf32> to vector<1x32xf32>
    %353 = vector.extract_strided_slice %343 {offsets = [0, 96], sizes = [1, 32], strides = [1, 1]} : vector<1x128xf32> to vector<1x32xf32>
    %354 = math.tanh %353 : vector<1x32xf32>
    %355 = arith.mulf %351, %335 : vector<1x32xf32>
    %356 = arith.mulf %350, %354 : vector<1x32xf32>
    %357 = arith.addf %355, %356 : vector<1x32xf32>
    %358 = math.tanh %357 : vector<1x32xf32>
    %359 = arith.mulf %352, %358 : vector<1x32xf32>
    %360 = arith.index_cast %c15_i32 : i32 to index
    %c0_74 = arith.constant 0 : index
    %361 = vector.load %arg8[%360, %c0_74] : memref<16x32xf32, #tpu.memory_space<vmem>>, vector<1x32xf32>
    tpu.vector_store %arg8[%360, %c0_74], %359 {strides = array<i32>} : memref<16x32xf32, #tpu.memory_space<vmem>>, vector<1x32xf32>,
    %c16_i32 = arith.constant 16 : i32
    %c0_75 = arith.constant 0 : index
    %c0_76 = arith.constant 0 : index
    %362 = vector.load %arg8[%c0_75, %c0_76] : memref<16x32xf32, #tpu.memory_space<vmem>>, vector<16x32xf32>
    %c0_77 = arith.constant 0 : index
    %c0_78 = arith.constant 0 : index
    %363 = vector.load %arg4[%c0_77, %c0_78] : memref<32x8xf32, #tpu.memory_space<vmem>>, vector<32x8xf32>
    %cst_79 = arith.constant dense<0.000000e+00> : vector<16x8xf32>
    %364 = tpu.matmul %362, %363, %cst_79 {dimension_numbers = #tpu.dot_dimension_numbers<[1], [0], [0], [1], [0, 0, 1, 1], [], []>} : vector<16x32xf32>, vector<32x8xf32>, vector<16x8xf32> -> vector<16x8xf32>
    %c0_80 = arith.constant 0 : index
    %c0_81 = arith.constant 0 : index
    %365 = vector.load %arg5[%c0_80, %c0_81] : memref<1x8xf32, #tpu.memory_space<vmem>>, vector<1x8xf32>
    %366 = vector.broadcast %365 : vector<1x8xf32> to vector<16x8xf32>
    %367 = arith.addf %364, %366 : vector<16x8xf32>
    %368 = arith.negf %367 : vector<16x8xf32>
    %369 = math.exp %368 : vector<16x8xf32>
    %cst_82 = arith.constant 1.000000e+00 : f32
    %370 = vector.broadcast %cst_82 : f32 to vector<16x8xf32>
    %371 = arith.addf %370, %369 : vector<16x8xf32>
    %372 = arith.divf %370, %371 : vector<16x8xf32>
    %373 = tpu.concatenate %372, %367 in 1 : vector<16x8xf32>, vector<16x8xf32> -> vector<16x16xf32>
    %c0_83 = arith.constant 0 : index
    %c0_84 = arith.constant 0 : index
    %374 = vector.load %arg6[%c0_83, %c0_84] : memref<16x16xf32, #tpu.memory_space<vmem>>, vector<16x16xf32>
    tpu.vector_store %arg6[%c0_83, %c0_84], %373 {strides = array<i32>} : memref<16x16xf32, #tpu.memory_space<vmem>>, vector<16x16xf32>,
    return
  }
}

</mosaic_0001>

<bundles_post_ra>
// kernel: lstm1d2_forward.1
= control target key start
LH: loop header
LB: loop body
LE: loop exit
PB: predicated region body
PF: predicated region fallthrough
CT: control target
= control target key end

     0   :  { %v1406_v11 = vmov 0.0   ;;  %vm37_vm0 = vcmask 523264   ;;  %s1407_s23 = smov 32   ;;  %vm140_vm5 = vcmask 253952   ;;  %vm74_vm6 = vcmask 261120   ;;  %s1409_s10 = smov 8   ;;  %s1692_s1 = inlined_call_operand.vmem [shape: f32[64,128], index: 1, kind: input, shape index: {}]   ;;  %s1693_s3 = inlined_call_operand.vmem [shape: f32[32,128], index: 3, kind: input, shape index: {}]   ;;  %s1694_s2 = inlined_call_operand.vmem [shape: f32[1,128], index: 2, kind: input, shape index: {}]   ;;  %s1695_s0 = inlined_call_operand.vmem [shape: f32[16,64], index: 0, kind: input, shape index: {}]   ;;  %s1696_s4 = inlined_call_operand.vmem [shape: f32[32,8], index: 4, kind: input, shape index: {}]   ;;  %s1697_s5 = inlined_call_operand.vmem [shape: f32[1,8], index: 5, kind: input, shape index: {}]   ;;  %s1698_s6 = inlined_call_operand.vmem [shape: f32[16,16], index: 6, kind: output, shape index: {}]  }
   0x1   :  { %v32_v0 = vld [vmem:[%s1692_s1 + $0x38] sm:$0xff]  ;;  %v31_v1 = vld [vmem:[%s1692_s1 + $0x30] sm:$0xff]  ;;  %v30_v2 = vld [vmem:[%s1692_s1 + $0x28] sm:$0xff] }
   0x2   :  { %52 = vmatpush.msra.mxu0 %v32_v0  ;;  %v1457_v3 = vld [vmem:[%s1693_s3 + $0x18] sm:$0xff]  ;;  %v1462_v4 = vld [vmem:[%s1693_s3 + $0x10] sm:$0xff]  ;;  %v29_v5 = vld [vmem:[%s1692_s1 + $0x20] sm:$0xff] }
   0x3   :  { %90 = vmatpush.msra.mxu1 %v1457_v3  ;;  %157 = vmatpush.msra.mxu2 %v1457_v3  ;;  %v1472_v6 = vld [vmem:[%s1693_s3 + $0x8] sm:$0xff]  ;;  %v28_v7 = vld [vmem:[%s1692_s1 + $0x18] sm:$0xff]  ;;  %v1483_v8 = vld [vmem:[%s1693_s3] sm:$0xff] }
   0x4   :  { %53 = vmatpush.msra.mxu0 %v31_v1  ;;  %223 = vmatpush.msra.mxu3 %v1457_v3  ;;  %v27_v9 = vld [vmem:[%s1692_s1 + $0x10] sm:$0xff]  ;;  %v26_v10 = vld [vmem:[%s1692_s1 + $0x8] sm:$0xff]  ;;  %v25_v12 = vld [vmem:[%s1692_s1] sm:$0xff] }
   0x5   :  { %91 = vmatpush.msra.mxu1 %v1462_v4  ;;  %158 = vmatpush.msra.mxu2 %v1462_v4  ;;  %v23_v13 = vld [vmem:[%s1695_s0] sm:$0xff] }
   0x6   :  { %54 = vmatpush.msra.mxu0 %v30_v2  ;;  %224 = vmatpush.msra.mxu3 %v1462_v4  ;;  %v1532_v14 = vld [vmem:[%s1694_s2] ss:$0 sm:$0xff]  ;;  %s1408_s2 = smov 64  }
   0x7   :  { %92 = vmatpush.msra.mxu1 %v1472_v6  ;;  %159 = vmatpush.msra.mxu2 %v1472_v6 }
   0x8   :  { %55 = vmatpush.msra.mxu0 %v29_v5  ;;  %225 = vmatpush.msra.mxu3 %v1472_v6 }
   0x9   :  { %93 = vmatpush.msra.mxu1 %v1483_v8  ;;  %160 = vmatpush.msra.mxu2 %v1483_v8 }
   0xa   :  { %56 = vmatpush.msra.mxu0 %v28_v7  ;;  %94 = vmatmul.f32.vlgmr.msra.gmra.mxu1 %v1406_v11 }
   0xb   :  { %226 = vmatpush.msra.mxu3 %v1483_v8  ;;  %289 = vmatpush.msrb.mxu1 %v1457_v3 }
   0xc   :  { %57 = vmatpush.msra.mxu0 %v27_v9  ;;  %355 = vmatpush.msrb.mxu2 %v1457_v3 }
   0xd   :  { %290 = vmatpush.msrb.mxu1 %v1462_v4  ;;  %421 = vmatpush.msrb.mxu3 %v1457_v3 }
   0xe   :  { %58 = vmatpush.msra.mxu0 %v26_v10  ;;  %356 = vmatpush.msrb.mxu2 %v1462_v4 }
   0xf   :  { %291 = vmatpush.msrb.mxu1 %v1472_v6  ;;  %422 = vmatpush.msrb.mxu3 %v1462_v4 }
  0x10   :  { %59 = vmatpush.msra.mxu0 %v25_v12  ;;  %357 = vmatpush.msrb.mxu2 %v1472_v6 }
  0x11   :  { %1227 = vmatmul.msk.f32.vlgmr.msra.gmra.mxu0 %vm37_vm0, %v23_v13  ;;  %292 = vmatpush.msrb.mxu1 %v1483_v8 }
  0x12   :  { %685 = vmatpush.msrb.mxu0 %v1457_v3  ;;  %358 = vmatpush.msrb.mxu2 %v1483_v8 }
  0x13   :  { %423 = vmatpush.msrb.mxu3 %v1472_v6  ;;  %487 = vmatpush.msra.mxu1 %v1457_v3 }
  0x14   :  { %686 = vmatpush.msrb.mxu0 %v1462_v4 }
  0x15   :  { %424 = vmatpush.msrb.mxu3 %v1483_v8  ;;  %488 = vmatpush.msra.mxu1 %v1462_v4 }
  0x16   :  { %687 = vmatpush.msrb.mxu0 %v1472_v6 }
  0x17   :  { %489 = vmatpush.msra.mxu1 %v1472_v6 }
  0x18   :  { %688 = vmatpush.msrb.mxu0 %v1483_v8 }
  0x19   :  { %490 = vmatpush.msra.mxu1 %v1483_v8 }
  0x1a   :  { %949 = vmatpush.msra.mxu0 %v1457_v3 }
  0x1c   :  { %950 = vmatpush.msra.mxu0 %v1462_v4 }
  0x1e   :  { %951 = vmatpush.msra.mxu0 %v1472_v6 }
  0x20   :  { %952 = vmatpush.msra.mxu0 %v1483_v8 }
  0x87   :  { %v95_v17 = vpop.f32.mrf.mxu1 }
  0x8e   :  { %v61_v15 = vpop.f32.mrf.mxu0 }
  0x8f   :  { %v62_v16 = vadd.f32 %v1532_v14, %v61_v15 }
  0x91   :  { %67 = vst [vmem:[#allocation2] sm:$0xff] %v62_v16 }
  0x98   :  { %v73_v18 = vld [vmem:[#allocation2] sm:$0x1]  ;;  %v142_v43 = vld [vmem:[#allocation2 + $0x1] sm:$0x1]  ;;  %v208_v9 = vld [vmem:[#allocation2 + $0x2] sm:$0x1] }
  0x99   :  { %v98_v19 = vadd.f32 %v95_v17, %v73_v18 }
  0x9b   :  { %1270 = vtanh.f32 %v98_v19  ;;  %v1229_v21 = vmul.f32 -1.442695, %v98_v19 }
  0x9d   :  { %1272 = vpow2.f32 %v1229_v21 }
  0xa1   :  { %v1271_v20 = vpop.eup %1270 }
  0xa2   :  { %121 = vrot.lane.b32.xlu0 %v1271_v20, %s1407_s23 }
  0xa3   :  { %v1273_v22 = vpop.eup %1272 }
  0xa4   :  { %v102_v23 = vadd.f32 1.0, %v1273_v22 }
  0xa6   :  { %1274 = vrcp.f32 %v102_v23  ;;  %v114_v29 = vand.u32 2147483648, %v102_v23  ;;  %vm108_vm2 = vweird.f32 %v102_v23  ;;  %v112_v30 = vand.u32 2147483647, %v102_v23 }
  0xa8   :  { %v115_v32 = vor.u32 1.1754944e-38, %v114_v29  ;;  %vm113_vm4 = vcmp.eq.f32.partialorder %v112_v30, 8.507059e+37 }
  0xac   :  { %v1275_v24 = vpop.eup %1274 }
  0xad   :  { %v104_v25 = vmul.f32 %v1275_v24, %v102_v23  ;;  %vm109_vm1 = vweird.f32 %v1275_v24 }
  0xae   :  { %vm110_vm3 = vmor %vm108_vm2, %vm109_vm1 }
  0xaf   :  { %v105_v26 = vsub.f32 1.0, %v104_v25 }
  0xb1   :  { %v106_v27 = vmul.f32 %v1275_v24, %v105_v26 }
  0xb3   :  { %v107_v28 = vadd.f32 %v1275_v24, %v106_v27 }
  0xb5   :  { %v111_v31 = vsel %vm110_vm3, %v1275_v24, %v107_v28 }
  0xb6   :  { %v116_v34 = vsel %vm113_vm4, %v115_v32, %v111_v31 }
  0xb7   :  { %v119_v36 = vmul.f32 0.0, %v116_v34 }
 0x114   :  { %v122_v33 = vpop.permute.xlu0 %121 }
 0x115   :  { %v124_v35 = vmul.f32 %v122_v33, %v116_v34 }
 0x117   :  { %126 = vrot.lane.b32.xlu0 %v124_v35, %s1407_s23 }
 0x189   :  { %v127_v37 = vpop.permute.xlu0 %126 }
 0x18a   :  { %v129_v38 = vadd.f32 %v127_v37, %v119_v36  ;;  %v274_v36 = vld [vmem:[#allocation2 + $0x3] sm:$0x1] }
 0x18c   :  { %1276 = vtanh.f32 %v129_v38 }
 0x192   :  { %v1277_v39 = vpop.eup %1276 }
 0x193   :  { %132 = vrot.lane.b32.xlu1 %v1277_v39, %s1407_s23 }
 0x205   :  { %v133_v40 = vpop.permute.xlu1 %132 }
 0x206   :  { %v135_v41 = vmul.f32 %v133_v40, %v116_v34 }
 0x208   :  { %137 = vrot.lane.b32.xlu1 %v135_v41, %s1408_s2 }
 0x27a   :  { %v138_v42 = vpop.permute.xlu1 %137 }
 0x27b   :  { %141 = vst.msk [vmem:[#allocation3] sm:$0x1] %vm140_vm5, %v138_v42  ;;  %1230 = vmatmul.msk.f32.vlgmr.msra.gmra.mxu2 %vm74_vm6, %v138_v42 }
 0x27c   :  { %553 = vmatpush.msra.mxu2 %v1457_v3 }
 0x27e   :  { %554 = vmatpush.msra.mxu2 %v1462_v4 }
 0x280   :  { %555 = vmatpush.msra.mxu2 %v1472_v6 }
 0x282   :  { %556 = vmatpush.msra.mxu2 %v1483_v8 }
 0x2fe   :  { %v162_v44 = vpop.f32.mrf.mxu2 }
 0x2ff   :  { %v165_v45 = vadd.f32 %v162_v44, %v142_v43 }
 0x301   :  { %1278 = vtanh.f32 %v165_v45  ;;  %v1231_v47 = vmul.f32 -1.442695, %v165_v45 }
 0x303   :  { %1280 = vpow2.f32 %v1231_v47 }
 0x307   :  { %v1279_v46 = vpop.eup %1278 }
 0x308   :  { %188 = vrot.lane.b32.xlu2 %v1279_v46, %s1407_s23 }
 0x309   :  { %v1281_v48 = vpop.eup %1280 }
 0x30a   :  { %v169_v49 = vadd.f32 1.0, %v1281_v48 }
 0x30c   :  { %1282 = vrcp.f32 %v169_v49  ;;  %v181_v55 = vand.u32 2147483648, %v169_v49  ;;  %vm175_vm8 = vweird.f32 %v169_v49  ;;  %v179_v56 = vand.u32 2147483647, %v169_v49 }
 0x30e   :  { %v182_v58 = vor.u32 1.1754944e-38, %v181_v55  ;;  %vm180_vm10 = vcmp.eq.f32.partialorder %v179_v56, 8.507059e+37 }
 0x312   :  { %v1283_v50 = vpop.eup %1282 }
 0x313   :  { %v171_v51 = vmul.f32 %v1283_v50, %v169_v49  ;;  %vm176_vm7 = vweird.f32 %v1283_v50 }
 0x314   :  { %vm177_vm9 = vmor %vm175_vm8, %vm176_vm7 }
 0x315   :  { %v172_v52 = vsub.f32 1.0, %v171_v51 }
 0x317   :  { %v173_v53 = vmul.f32 %v1283_v50, %v172_v52 }
 0x319   :  { %v174_v54 = vadd.f32 %v1283_v50, %v173_v53 }
 0x31b   :  { %v178_v57 = vsel %vm177_vm9, %v1283_v50, %v174_v54 }
 0x31c   :  { %v183_v60 = vsel %vm180_vm10, %v182_v58, %v178_v57 }
 0x31d   :  { %v186_v62 = vmul.f32 %v183_v60, %v129_v38 }
 0x362   :  { %v189_v59 = vpop.permute.xlu2 %188 }
 0x363   :  { %v191_v61 = vmul.f32 %v189_v59, %v183_v60 }
 0x365   :  { %193 = vrot.lane.b32.xlu2 %v191_v61, %s1407_s23 }
 0x3bf   :  { %v194_v63 = vpop.permute.xlu2 %193 }
 0x3c0   :  { %v196_v0 = vadd.f32 %v194_v63, %v186_v62  ;;  %v340_v62 = vld [vmem:[#allocation2 + $0x4] sm:$0x1] }
 0x3c2   :  { %1284 = vtanh.f32 %v196_v0 }
 0x3c8   :  { %v1285_v1 = vpop.eup %1284 }
 0x3c9   :  { %199 = vrot.lane.b32.xlu0 %v1285_v1, %s1407_s23 }
 0x43b   :  { %v200_v2 = vpop.permute.xlu0 %199 }
 0x43c   :  { %v202_v5 = vmul.f32 %v200_v2, %v183_v60 }
 0x43e   :  { %204 = vrot.lane.b32.xlu1 %v202_v5, %s1408_s2 }
 0x4b0   :  { %v205_v7 = vpop.permute.xlu1 %204 }
 0x4b1   :  { %207 = vst.msk [vmem:[#allocation3 + $0x1] sm:$0x1] %vm140_vm5, %v205_v7  ;;  %1232 = vmatmul.msk.f32.vlgmr.msra.gmra.mxu3 %vm74_vm6, %v205_v7 }
 0x4b2   :  { %619 = vmatpush.msra.mxu3 %v1457_v3 }
 0x4b4   :  { %620 = vmatpush.msra.mxu3 %v1462_v4 }
 0x4b6   :  { %621 = vmatpush.msra.mxu3 %v1472_v6 }
 0x4b8   :  { %622 = vmatpush.msra.mxu3 %v1483_v8 }
 0x534   :  { %v228_v10 = vpop.f32.mrf.mxu3 }
 0x535   :  { %v231_v11 = vadd.f32 %v228_v10, %v208_v9 }
 0x537   :  { %1286 = vtanh.f32 %v231_v11  ;;  %v1233_v13 = vmul.f32 -1.442695, %v231_v11 }
 0x539   :  { %1288 = vpow2.f32 %v1233_v13 }
 0x53d   :  { %v1287_v12 = vpop.eup %1286 }
 0x53e   :  { %254 = vrot.lane.b32.xlu2 %v1287_v12, %s1407_s23 }
 0x53f   :  { %v1289_v15 = vpop.eup %1288 }
 0x540   :  { %v235_v16 = vadd.f32 1.0, %v1289_v15 }
 0x542   :  { %1290 = vrcp.f32 %v235_v16  ;;  %v247_v22 = vand.u32 2147483648, %v235_v16  ;;  %vm241_vm12 = vweird.f32 %v235_v16  ;;  %v245_v23 = vand.u32 2147483647, %v235_v16 }
 0x544   :  { %v248_v25 = vor.u32 1.1754944e-38, %v247_v22  ;;  %vm246_vm14 = vcmp.eq.f32.partialorder %v245_v23, 8.507059e+37 }
 0x548   :  { %v1291_v17 = vpop.eup %1290 }
 0x549   :  { %v237_v18 = vmul.f32 %v1291_v17, %v235_v16  ;;  %vm242_vm11 = vweird.f32 %v1291_v17 }
 0x54a   :  { %vm243_vm13 = vmor %vm241_vm12, %vm242_vm11 }
 0x54b   :  { %v238_v19 = vsub.f32 1.0, %v237_v18 }
 0x54d   :  { %v239_v20 = vmul.f32 %v1291_v17, %v238_v19 }
 0x54f   :  { %v240_v21 = vadd.f32 %v1291_v17, %v239_v20 }
 0x551   :  { %v244_v24 = vsel %vm243_vm13, %v1291_v17, %v240_v21 }
 0x552   :  { %v249_v27 = vsel %vm246_vm14, %v248_v25, %v244_v24 }
 0x553   :  { %v252_v29 = vmul.f32 %v249_v27, %v196_v0 }
 0x598   :  { %v255_v26 = vpop.permute.xlu2 %254 }
 0x599   :  { %v257_v28 = vmul.f32 %v255_v26, %v249_v27 }
 0x59b   :  { %259 = vrot.lane.b32.xlu0 %v257_v28, %s1407_s23 }
 0x60d   :  { %v260_v30 = vpop.permute.xlu0 %259 }
 0x60e   :  { %v262_v31 = vadd.f32 %v260_v30, %v252_v29  ;;  %v406_v29 = vld [vmem:[#allocation2 + $0x5] sm:$0x1] }
 0x610   :  { %1292 = vtanh.f32 %v262_v31 }
 0x616   :  { %v1293_v32 = vpop.eup %1292 }
 0x617   :  { %265 = vrot.lane.b32.xlu1 %v1293_v32, %s1407_s23 }
 0x689   :  { %v266_v33 = vpop.permute.xlu1 %265 }
 0x68a   :  { %v268_v34 = vmul.f32 %v266_v33, %v249_v27 }
 0x68c   :  { %270 = vrot.lane.b32.xlu2 %v268_v34, %s1408_s2 }
 0x6e6   :  { %v271_v35 = vpop.permute.xlu2 %270 }
 0x6e7   :  { %273 = vst.msk [vmem:[#allocation3 + $0x2] sm:$0x1] %vm140_vm5, %v271_v35  ;;  %1234 = vmatmul.msk.f32.vlgmr.msrb.gmra.mxu1 %vm74_vm6, %v271_v35 }
 0x6e8   :  { %751 = vmatpush.msrb.mxu1 %v1457_v3 }
 0x6ea   :  { %752 = vmatpush.msrb.mxu1 %v1462_v4 }
 0x6ec   :  { %753 = vmatpush.msrb.mxu1 %v1472_v6 }
 0x6ee   :  { %754 = vmatpush.msrb.mxu1 %v1483_v8 }
 0x764   :  { %v294_v37 = vpop.f32.mrf.mxu1 }
 0x765   :  { %v297_v38 = vadd.f32 %v294_v37, %v274_v36 }
 0x767   :  { %1294 = vtanh.f32 %v297_v38  ;;  %v1235_v40 = vmul.f32 -1.442695, %v297_v38 }
 0x769   :  { %1296 = vpow2.f32 %v1235_v40 }
 0x76d   :  { %v1295_v39 = vpop.eup %1294 }
 0x76e   :  { %320 = vrot.lane.b32.xlu0 %v1295_v39, %s1407_s23 }
 0x76f   :  { %v1297_v41 = vpop.eup %1296 }
 0x770   :  { %v301_v42 = vadd.f32 1.0, %v1297_v41 }
 0x772   :  { %1298 = vrcp.f32 %v301_v42  ;;  %v313_v48 = vand.u32 2147483648, %v301_v42  ;;  %vm307_vm1 = vweird.f32 %v301_v42  ;;  %v311_v49 = vand.u32 2147483647, %v301_v42 }
 0x774   :  { %v314_v51 = vor.u32 1.1754944e-38, %v313_v48  ;;  %vm312_vm3 = vcmp.eq.f32.partialorder %v311_v49, 8.507059e+37 }
 0x778   :  { %v1299_v43 = vpop.eup %1298 }
 0x779   :  { %v303_v44 = vmul.f32 %v1299_v43, %v301_v42  ;;  %vm308_vm15 = vweird.f32 %v1299_v43 }
 0x77a   :  { %vm309_vm2 = vmor %vm307_vm1, %vm308_vm15 }
 0x77b   :  { %v304_v45 = vsub.f32 1.0, %v303_v44 }
 0x77d   :  { %v305_v46 = vmul.f32 %v1299_v43, %v304_v45 }
 0x77f   :  { %v306_v47 = vadd.f32 %v1299_v43, %v305_v46 }
 0x781   :  { %v310_v50 = vsel %vm309_vm2, %v1299_v43, %v306_v47 }
 0x782   :  { %v315_v53 = vsel %vm312_vm3, %v314_v51, %v310_v50 }
 0x783   :  { %v318_v55 = vmul.f32 %v315_v53, %v262_v31 }
 0x7e0   :  { %v321_v52 = vpop.permute.xlu0 %320 }
 0x7e1   :  { %v323_v54 = vmul.f32 %v321_v52, %v315_v53 }
 0x7e3   :  { %325 = vrot.lane.b32.xlu1 %v323_v54, %s1407_s23 }
 0x855   :  { %v326_v56 = vpop.permute.xlu1 %325 }
 0x856   :  { %v328_v57 = vadd.f32 %v326_v56, %v318_v55  ;;  %v472_v55 = vld [vmem:[#allocation2 + $0x6] sm:$0x1] }
 0x858   :  { %1300 = vtanh.f32 %v328_v57 }
 0x85e   :  { %v1301_v58 = vpop.eup %1300 }
 0x85f   :  { %331 = vrot.lane.b32.xlu2 %v1301_v58, %s1407_s23 }
 0x8b9   :  { %v332_v59 = vpop.permute.xlu2 %331 }
 0x8ba   :  { %v334_v60 = vmul.f32 %v332_v59, %v315_v53 }
 0x8bc   :  { %336 = vrot.lane.b32.xlu0 %v334_v60, %s1408_s2 }
 0x92e   :  { %v337_v61 = vpop.permute.xlu0 %336 }
 0x92f   :  { %339 = vst.msk [vmem:[#allocation3 + $0x3] sm:$0x1] %vm140_vm5, %v337_v61  ;;  %1236 = vmatmul.msk.f32.vlgmr.msrb.gmra.mxu2 %vm74_vm6, %v337_v61 }
 0x930   :  { %817 = vmatpush.msrb.mxu2 %v1457_v3 }
 0x932   :  { %818 = vmatpush.msrb.mxu2 %v1462_v4 }
 0x934   :  { %819 = vmatpush.msrb.mxu2 %v1472_v6 }
 0x936   :  { %820 = vmatpush.msrb.mxu2 %v1483_v8 }
 0x9b2   :  { %v360_v63 = vpop.f32.mrf.mxu2 }
 0x9b3   :  { %v363_v0 = vadd.f32 %v360_v63, %v340_v62 }
 0x9b5   :  { %1302 = vtanh.f32 %v363_v0  ;;  %v1237_v2 = vmul.f32 -1.442695, %v363_v0 }
 0x9b7   :  { %1304 = vpow2.f32 %v1237_v2 }
 0x9bb   :  { %v1303_v1 = vpop.eup %1302 }
 0x9bc   :  { %386 = vrot.lane.b32.xlu1 %v1303_v1, %s1407_s23 }
 0x9bd   :  { %v1305_v5 = vpop.eup %1304 }
 0x9be   :  { %v367_v7 = vadd.f32 1.0, %v1305_v5 }
 0x9c0   :  { %1306 = vrcp.f32 %v367_v7  ;;  %v379_v15 = vand.u32 2147483648, %v367_v7  ;;  %vm373_vm7 = vweird.f32 %v367_v7  ;;  %v377_v16 = vand.u32 2147483647, %v367_v7 }
 0x9c2   :  { %v380_v18 = vor.u32 1.1754944e-38, %v379_v15  ;;  %vm378_vm9 = vcmp.eq.f32.partialorder %v377_v16, 8.507059e+37 }
 0x9c6   :  { %v1307_v9 = vpop.eup %1306 }
 0x9c7   :  { %v369_v10 = vmul.f32 %v1307_v9, %v367_v7  ;;  %vm374_vm4 = vweird.f32 %v1307_v9 }
 0x9c8   :  { %vm375_vm8 = vmor %vm373_vm7, %vm374_vm4 }
 0x9c9   :  { %v370_v11 = vsub.f32 1.0, %v369_v10 }
 0x9cb   :  { %v371_v12 = vmul.f32 %v1307_v9, %v370_v11 }
 0x9cd   :  { %v372_v13 = vadd.f32 %v1307_v9, %v371_v12 }
 0x9cf   :  { %v376_v17 = vsel %vm375_vm8, %v1307_v9, %v372_v13 }
 0x9d0   :  { %v381_v20 = vsel %vm378_vm9, %v380_v18, %v376_v17 }
 0x9d1   :  { %v384_v22 = vmul.f32 %v381_v20, %v328_v57 }
 0xa2e   :  { %v387_v19 = vpop.permute.xlu1 %386 }
 0xa2f   :  { %v389_v21 = vmul.f32 %v387_v19, %v381_v20 }
 0xa31   :  { %391 = vrot.lane.b32.xlu2 %v389_v21, %s1407_s23 }
 0xa8b   :  { %v392_v23 = vpop.permute.xlu2 %391 }
 0xa8c   :  { %v394_v24 = vadd.f32 %v392_v23, %v384_v22  ;;  %v538_v22 = vld [vmem:[#allocation2 + $0x7] sm:$0x1] }
 0xa8e   :  { %1308 = vtanh.f32 %v394_v24 }
 0xa94   :  { %v1309_v25 = vpop.eup %1308 }
 0xa95   :  { %397 = vrot.lane.b32.xlu0 %v1309_v25, %s1407_s23 }
 0xb07   :  { %v398_v26 = vpop.permute.xlu0 %397 }
 0xb08   :  { %v400_v27 = vmul.f32 %v398_v26, %v381_v20 }
 0xb0a   :  { %402 = vrot.lane.b32.xlu1 %v400_v27, %s1408_s2 }
 0xb7c   :  { %v403_v28 = vpop.permute.xlu1 %402 }
 0xb7d   :  { %405 = vst.msk [vmem:[#allocation3 + $0x4] sm:$0x1] %vm140_vm5, %v403_v28  ;;  %1238 = vmatmul.msk.f32.vlgmr.msrb.gmra.mxu3 %vm74_vm6, %v403_v28 }
 0xb7e   :  { %883 = vmatpush.msrb.mxu3 %v1457_v3 }
 0xb80   :  { %884 = vmatpush.msrb.mxu3 %v1462_v4 }
 0xb82   :  { %885 = vmatpush.msrb.mxu3 %v1472_v6 }
 0xb84   :  { %886 = vmatpush.msrb.mxu3 %v1483_v8 }
 0xc00   :  { %v426_v30 = vpop.f32.mrf.mxu3 }
 0xc01   :  { %v429_v31 = vadd.f32 %v426_v30, %v406_v29 }
 0xc03   :  { %1310 = vtanh.f32 %v429_v31  ;;  %v1239_v33 = vmul.f32 -1.442695, %v429_v31 }
 0xc05   :  { %1312 = vpow2.f32 %v1239_v33 }
 0xc09   :  { %v1311_v32 = vpop.eup %1310 }
 0xc0a   :  { %452 = vrot.lane.b32.xlu2 %v1311_v32, %s1407_s23 }
 0xc0b   :  { %v1313_v34 = vpop.eup %1312 }
 0xc0c   :  { %v433_v35 = vadd.f32 1.0, %v1313_v34 }
 0xc0e   :  { %1314 = vrcp.f32 %v433_v35  ;;  %v445_v41 = vand.u32 2147483648, %v433_v35  ;;  %vm439_vm11 = vweird.f32 %v433_v35  ;;  %v443_v42 = vand.u32 2147483647, %v433_v35 }
 0xc10   :  { %v446_v44 = vor.u32 1.1754944e-38, %v445_v41  ;;  %vm444_vm13 = vcmp.eq.f32.partialorder %v443_v42, 8.507059e+37  ;;  %v24_v41 = vld [vmem:[%s1695_s0 + $0x8] sm:$0xff] }
 0xc11   :  { %1228 = vmatmul.msk.f32.gmra.mxu0 %vm37_vm0, %v24_v41 }
 0xc14   :  { %v1315_v36 = vpop.eup %1314 }
 0xc15   :  { %v435_v37 = vmul.f32 %v1315_v36, %v433_v35  ;;  %vm440_vm10 = vweird.f32 %v1315_v36 }
 0xc16   :  { %vm441_vm12 = vmor %vm439_vm11, %vm440_vm10 }
 0xc17   :  { %v436_v38 = vsub.f32 1.0, %v435_v37 }
 0xc19   :  { %v437_v39 = vmul.f32 %v1315_v36, %v436_v38 }
 0xc1b   :  { %v438_v40 = vadd.f32 %v1315_v36, %v437_v39 }
 0xc1d   :  { %v442_v43 = vsel %vm441_vm12, %v1315_v36, %v438_v40 }
 0xc1e   :  { %v447_v46 = vsel %vm444_vm13, %v446_v44, %v442_v43 }
 0xc1f   :  { %v450_v48 = vmul.f32 %v447_v46, %v394_v24 }
 0xc64   :  { %v453_v45 = vpop.permute.xlu2 %452 }
 0xc65   :  { %v455_v47 = vmul.f32 %v453_v45, %v447_v46 }
 0xc67   :  { %457 = vrot.lane.b32.xlu0 %v455_v47, %s1407_s23 }
 0xc8e   :  { %v64_v44 = vpop.f32.mrf.mxu0 }
 0xc8f   :  { %v65_v45 = vadd.f32 %v1532_v14, %v64_v44 }
 0xc91   :  { %68 = vst [vmem:[#allocation2 + $0x8] sm:$0xff] %v65_v45 }
 0xc98   :  { %v604_v47 = vld [vmem:[#allocation2 + $0x8] sm:$0x1] }
 0xcd9   :  { %v458_v49 = vpop.permute.xlu0 %457 }
 0xcda   :  { %v460_v50 = vadd.f32 %v458_v49, %v450_v48 }
 0xcdc   :  { %1316 = vtanh.f32 %v460_v50 }
 0xce2   :  { %v1317_v51 = vpop.eup %1316 }
 0xce3   :  { %463 = vrot.lane.b32.xlu1 %v1317_v51, %s1407_s23 }
 0xd55   :  { %v464_v52 = vpop.permute.xlu1 %463 }
 0xd56   :  { %v466_v53 = vmul.f32 %v464_v52, %v447_v46 }
 0xd58   :  { %468 = vrot.lane.b32.xlu2 %v466_v53, %s1408_s2 }
 0xdb2   :  { %v469_v54 = vpop.permute.xlu2 %468 }
 0xdb3   :  { %471 = vst.msk [vmem:[#allocation3 + $0x5] sm:$0x1] %vm140_vm5, %v469_v54  ;;  %1240 = vmatmul.msk.f32.vlgmr.msra.gmra.mxu1 %vm74_vm6, %v469_v54 }
 0xdb4   :  { %1015 = vmatpush.msra.mxu1 %v1457_v3 }
 0xdb6   :  { %1016 = vmatpush.msra.mxu1 %v1462_v4 }
 0xdb8   :  { %1017 = vmatpush.msra.mxu1 %v1472_v6 }
 0xdba   :  { %1018 = vmatpush.msra.mxu1 %v1483_v8 }
 0xe30   :  { %v492_v56 = vpop.f32.mrf.mxu1 }
 0xe31   :  { %v495_v57 = vadd.f32 %v492_v56, %v472_v55 }
 0xe33   :  { %1318 = vtanh.f32 %v495_v57  ;;  %v1241_v59 = vmul.f32 -1.442695, %v495_v57 }
 0xe35   :  { %1320 = vpow2.f32 %v1241_v59 }
 0xe39   :  { %v1319_v58 = vpop.eup %1318 }
 0xe3a   :  { %518 = vrot.lane.b32.xlu0 %v1319_v58, %s1407_s23 }
 0xe3b   :  { %v1321_v60 = vpop.eup %1320 }
 0xe3c   :  { %v499_v61 = vadd.f32 1.0, %v1321_v60 }
 0xe3e   :  { %1322 = vrcp.f32 %v499_v61  ;;  %v511_v5 = vand.u32 2147483648, %v499_v61  ;;  %vm505_vm15 = vweird.f32 %v499_v61  ;;  %v509_v7 = vand.u32 2147483647, %v499_v61 }
 0xe40   :  { %v512_v10 = vor.u32 1.1754944e-38, %v511_v5  ;;  %vm510_vm2 = vcmp.eq.f32.partialorder %v509_v7, 8.507059e+37 }
 0xe44   :  { %v1323_v62 = vpop.eup %1322 }
 0xe45   :  { %v501_v63 = vmul.f32 %v1323_v62, %v499_v61  ;;  %vm506_vm14 = vweird.f32 %v1323_v62 }
 0xe46   :  { %vm507_vm1 = vmor %vm505_vm15, %vm506_vm14 }
 0xe47   :  { %v502_v0 = vsub.f32 1.0, %v501_v63 }
 0xe49   :  { %v503_v1 = vmul.f32 %v1323_v62, %v502_v0 }
 0xe4b   :  { %v504_v2 = vadd.f32 %v1323_v62, %v503_v1 }
 0xe4d   :  { %v508_v9 = vsel %vm507_vm1, %v1323_v62, %v504_v2 }
 0xe4e   :  { %v513_v12 = vsel %vm510_vm2, %v512_v10, %v508_v9 }
 0xe4f   :  { %v516_v15 = vmul.f32 %v513_v12, %v460_v50 }
 0xeac   :  { %v519_v11 = vpop.permute.xlu0 %518 }
 0xead   :  { %v521_v13 = vmul.f32 %v519_v11, %v513_v12 }
 0xeaf   :  { %523 = vrot.lane.b32.xlu1 %v521_v13, %s1407_s23 }
 0xf21   :  { %v524_v16 = vpop.permute.xlu1 %523 }
 0xf22   :  { %v526_v17 = vadd.f32 %v524_v16, %v516_v15 }
 0xf24   :  { %1324 = vtanh.f32 %v526_v17 }
 0xf2a   :  { %v1325_v18 = vpop.eup %1324 }
 0xf2b   :  { %529 = vrot.lane.b32.xlu2 %v1325_v18, %s1407_s23 }
 0xf85   :  { %v530_v19 = vpop.permute.xlu2 %529 }
 0xf86   :  { %v532_v20 = vmul.f32 %v530_v19, %v513_v12  ;;  %v670_v12 = vld [vmem:[#allocation2 + $0x9] sm:$0x1] }
 0xf88   :  { %534 = vrot.lane.b32.xlu0 %v532_v20, %s1408_s2 }
 0xffa   :  { %v535_v21 = vpop.permute.xlu0 %534 }
 0xffb   :  { %537 = vst.msk [vmem:[#allocation3 + $0x6] sm:$0x1] %vm140_vm5, %v535_v21  ;;  %1242 = vmatmul.msk.f32.vlgmr.msra.gmra.mxu2 %vm74_vm6, %v535_v21 }
 0xffc   :  { %1081 = vmatpush.msra.mxu2 %v1457_v3 }
 0xffe   :  { %1082 = vmatpush.msra.mxu2 %v1462_v4 }
0x1000   :  { %1083 = vmatpush.msra.mxu2 %v1472_v6 }
0x1002   :  { %1084 = vmatpush.msra.mxu2 %v1483_v8 }
0x107e   :  { %v558_v23 = vpop.f32.mrf.mxu2 }
0x107f   :  { %v561_v24 = vadd.f32 %v558_v23, %v538_v22 }
0x1081   :  { %1326 = vtanh.f32 %v561_v24  ;;  %v1243_v26 = vmul.f32 -1.442695, %v561_v24 }
0x1083   :  { %1328 = vpow2.f32 %v1243_v26 }
0x1087   :  { %v1327_v25 = vpop.eup %1326 }
0x1088   :  { %584 = vrot.lane.b32.xlu1 %v1327_v25, %s1407_s23 }
0x1089   :  { %v1329_v27 = vpop.eup %1328 }
0x108a   :  { %v565_v28 = vadd.f32 1.0, %v1329_v27 }
0x108c   :  { %1330 = vrcp.f32 %v565_v28  ;;  %v577_v6 = vand.u32 2147483648, %v565_v28  ;;  %vm571_vm4 = vweird.f32 %v565_v28  ;;  %v575_v8 = vand.u32 2147483647, %v565_v28 }
0x108e   :  { %v578_v33 = vor.u32 1.1754944e-38, %v577_v6  ;;  %vm576_vm8 = vcmp.eq.f32.partialorder %v575_v8, 8.507059e+37 }
0x1092   :  { %v1331_v29 = vpop.eup %1330 }
0x1093   :  { %v567_v3 = vmul.f32 %v1331_v29, %v565_v28  ;;  %vm572_vm3 = vweird.f32 %v1331_v29 }
0x1094   :  { %vm573_vm7 = vmor %vm571_vm4, %vm572_vm3 }
0x1095   :  { %v568_v30 = vsub.f32 1.0, %v567_v3 }
0x1097   :  { %v569_v4 = vmul.f32 %v1331_v29, %v568_v30 }
0x1099   :  { %v570_v31 = vadd.f32 %v1331_v29, %v569_v4 }
0x109b   :  { %v574_v32 = vsel %vm573_vm7, %v1331_v29, %v570_v31 }
0x109c   :  { %v579_v35 = vsel %vm576_vm8, %v578_v33, %v574_v32 }
0x109d   :  { %v582_v37 = vmul.f32 %v579_v35, %v526_v17 }
0x10fa   :  { %v585_v34 = vpop.permute.xlu1 %584 }
0x10fb   :  { %v587_v36 = vmul.f32 %v585_v34, %v579_v35 }
0x10fd   :  { %589 = vrot.lane.b32.xlu2 %v587_v36, %s1407_s23 }
0x1157   :  { %v590_v38 = vpop.permute.xlu2 %589 }
0x1158   :  { %v592_v39 = vadd.f32 %v590_v38, %v582_v37 }
0x115a   :  { %1332 = vtanh.f32 %v592_v39 }
0x1160   :  { %v1333_v40 = vpop.eup %1332 }
0x1161   :  { %595 = vrot.lane.b32.xlu0 %v1333_v40, %s1407_s23 }
0x11d3   :  { %v596_v42 = vpop.permute.xlu0 %595 }
0x11d4   :  { %v598_v43 = vmul.f32 %v596_v42, %v579_v35  ;;  %v736_v35 = vld [vmem:[#allocation2 + $0xa] sm:$0x1] }
0x11d6   :  { %600 = vrot.lane.b32.xlu1 %v598_v43, %s1408_s2 }
0x1248   :  { %v601_v46 = vpop.permute.xlu1 %600 }
0x1249   :  { %603 = vst.msk [vmem:[#allocation3 + $0x7] sm:$0x1] %vm140_vm5, %v601_v46  ;;  %1244 = vmatmul.msk.f32.vlgmr.msra.gmra.mxu3 %vm74_vm6, %v601_v46 }
0x12cc   :  { %v624_v48 = vpop.f32.mrf.mxu3 }
0x12cd   :  { %v627_v49 = vadd.f32 %v624_v48, %v604_v47 }
0x12cf   :  { %1334 = vtanh.f32 %v627_v49  ;;  %v1245_v51 = vmul.f32 -1.442695, %v627_v49 }
0x12d1   :  { %1336 = vpow2.f32 %v1245_v51 }
0x12d5   :  { %v1335_v50 = vpop.eup %1334 }
0x12d6   :  { %650 = vrot.lane.b32.xlu2 %v1335_v50, %s1407_s23 }
0x12d7   :  { %v1337_v52 = vpop.eup %1336 }
0x12d8   :  { %v631_v53 = vadd.f32 1.0, %v1337_v52 }
0x12da   :  { %1338 = vrcp.f32 %v631_v53  ;;  %v643_v58 = vand.u32 2147483648, %v631_v53  ;;  %vm637_vm9 = vweird.f32 %v631_v53  ;;  %v641_v59 = vand.u32 2147483647, %v631_v53 }
0x12dc   :  { %v644_v61 = vor.u32 1.1754944e-38, %v643_v58  ;;  %vm642_vm11 = vcmp.eq.f32.partialorder %v641_v59, 8.507059e+37 }
0x12e0   :  { %v1339_v54 = vpop.eup %1338 }
0x12e1   :  { %v633_v14 = vmul.f32 %v1339_v54, %v631_v53  ;;  %vm638_vm0 = vweird.f32 %v1339_v54 }
0x12e2   :  { %vm639_vm10 = vmor %vm637_vm9, %vm638_vm0 }
0x12e3   :  { %v634_v55 = vsub.f32 1.0, %v633_v14 }
0x12e5   :  { %v635_v56 = vmul.f32 %v1339_v54, %v634_v55 }
0x12e7   :  { %v636_v57 = vadd.f32 %v1339_v54, %v635_v56 }
0x12e9   :  { %v640_v60 = vsel %vm639_vm10, %v1339_v54, %v636_v57 }
0x12ea   :  { %v645_v63 = vsel %vm642_vm11, %v644_v61, %v640_v60  ;;  %v802_v60 = vld [vmem:[#allocation2 + $0xb] sm:$0x1] }
0x12eb   :  { %v648_v1 = vmul.f32 %v645_v63, %v592_v39 }
0x1330   :  { %v651_v62 = vpop.permute.xlu2 %650 }
0x1331   :  { %v653_v0 = vmul.f32 %v651_v62, %v645_v63 }
0x1333   :  { %655 = vrot.lane.b32.xlu0 %v653_v0, %s1407_s23 }
0x13a5   :  { %v656_v2 = vpop.permute.xlu0 %655 }
0x13a6   :  { %v658_v5 = vadd.f32 %v656_v2, %v648_v1 }
0x13a8   :  { %1340 = vtanh.f32 %v658_v5 }
0x13ae   :  { %v1341_v7 = vpop.eup %1340 }
0x13af   :  { %661 = vrot.lane.b32.xlu1 %v1341_v7, %s1407_s23 }
0x1421   :  { %v662_v9 = vpop.permute.xlu1 %661 }
0x1422   :  { %v664_v10 = vmul.f32 %v662_v9, %v645_v63 }
0x1424   :  { %666 = vrot.lane.b32.xlu2 %v664_v10, %s1408_s2 }
0x147e   :  { %v667_v11 = vpop.permute.xlu2 %666 }
0x147f   :  { %669 = vst.msk [vmem:[#allocation3 + $0x8] sm:$0x1] %vm140_vm5, %v667_v11  ;;  %1246 = vmatmul.msk.f32.vlgmr.msrb.gmra.mxu0 %vm74_vm6, %v667_v11 }
0x14fc   :  { %v690_v13 = vpop.f32.mrf.mxu0 }
0x14fd   :  { %v693_v15 = vadd.f32 %v690_v13, %v670_v12 }
0x14ff   :  { %1342 = vtanh.f32 %v693_v15  ;;  %v1247_v17 = vmul.f32 -1.442695, %v693_v15 }
0x1501   :  { %1344 = vpow2.f32 %v1247_v17 }
0x1505   :  { %v1343_v16 = vpop.eup %1342 }
0x1506   :  { %716 = vrot.lane.b32.xlu0 %v1343_v16, %s1407_s23 }
0x1507   :  { %v1345_v18 = vpop.eup %1344 }
0x1508   :  { %v697_v19 = vadd.f32 1.0, %v1345_v18 }
0x150a   :  { %1346 = vrcp.f32 %v697_v19  ;;  %v709_v25 = vand.u32 2147483648, %v697_v19  ;;  %vm703_vm13 = vweird.f32 %v697_v19  ;;  %v707_v26 = vand.u32 2147483647, %v697_v19 }
0x150c   :  { %v710_v28 = vor.u32 1.1754944e-38, %v709_v25  ;;  %vm708_vm15 = vcmp.eq.f32.partialorder %v707_v26, 8.507059e+37  ;;  %v1137_v26 = vld [vmem:[%s1696_s4 + $0x18] sm:$0xff] }
0x150d   :  { %1160 = vmatpush.msra.mxu3 %v1137_v26 }
0x1510   :  { %v1347_v20 = vpop.eup %1346 }
0x1511   :  { %v699_v21 = vmul.f32 %v1347_v20, %v697_v19  ;;  %vm704_vm12 = vweird.f32 %v1347_v20 }
0x1512   :  { %vm705_vm14 = vmor %vm703_vm13, %vm704_vm12 }
0x1513   :  { %v700_v22 = vsub.f32 1.0, %v699_v21 }
0x1515   :  { %v701_v23 = vmul.f32 %v1347_v20, %v700_v22 }
0x1517   :  { %v702_v24 = vadd.f32 %v1347_v20, %v701_v23 }
0x1519   :  { %v706_v27 = vsel %vm705_vm14, %v1347_v20, %v702_v24 }
0x151a   :  { %v711_v3 = vsel %vm708_vm15, %v710_v28, %v706_v27  ;;  %v1136_v27 = vld [vmem:[%s1696_s4 + $0x10] sm:$0xff]  ;;  %v1135_v28 = vld [vmem:[%s1696_s4 + $0x8] sm:$0xff] }
0x151b   :  { %v714_v4 = vmul.f32 %v711_v3, %v658_v5  ;;  %1161 = vmatpush.msra.mxu3 %v1136_v27 }
0x151d   :  { %1162 = vmatpush.msra.mxu3 %v1135_v28 }
0x1578   :  { %v717_v29 = vpop.permute.xlu0 %716 }
0x1579   :  { %v719_v30 = vmul.f32 %v717_v29, %v711_v3  ;;  %v1134_v29 = vld [vmem:[%s1696_s4] sm:$0xff] }
0x157a   :  { %1163 = vmatpush.msra.mxu3 %v1134_v29 }
0x157b   :  { %721 = vrot.lane.b32.xlu1 %v719_v30, %s1407_s23  ;;  %v1132_v30 = vld [vmem:[#allocation3] sm:$0xff] }
0x15ed   :  { %v722_v31 = vpop.permute.xlu1 %721 }
0x15ee   :  { %v724_v6 = vadd.f32 %v722_v31, %v714_v4  ;;  %v868_v4 = vld [vmem:[#allocation2 + $0xc] sm:$0x1] }
0x15f0   :  { %1348 = vtanh.f32 %v724_v6 }
0x15f6   :  { %v1349_v8 = vpop.eup %1348 }
0x15f7   :  { %727 = vrot.lane.b32.xlu2 %v1349_v8, %s1407_s23 }
0x1651   :  { %v728_v32 = vpop.permute.xlu2 %727 }
0x1652   :  { %v730_v33 = vmul.f32 %v728_v32, %v711_v3 }
0x1654   :  { %732 = vrot.lane.b32.xlu0 %v730_v33, %s1408_s2 }
0x16c6   :  { %v733_v34 = vpop.permute.xlu0 %732 }
0x16c7   :  { %735 = vst.msk [vmem:[#allocation3 + $0x9] sm:$0x1] %vm140_vm5, %v733_v34  ;;  %1248 = vmatmul.msk.f32.vlgmr.msrb.gmra.mxu1 %vm74_vm6, %v733_v34 }
0x1744   :  { %v756_v36 = vpop.f32.mrf.mxu1 }
0x1745   :  { %v759_v37 = vadd.f32 %v756_v36, %v736_v35 }
0x1747   :  { %1350 = vtanh.f32 %v759_v37  ;;  %v1249_v39 = vmul.f32 -1.442695, %v759_v37 }
0x1749   :  { %1352 = vpow2.f32 %v1249_v39 }
0x174d   :  { %v1351_v38 = vpop.eup %1350 }
0x174e   :  { %782 = vrot.lane.b32.xlu1 %v1351_v38, %s1407_s23 }
0x174f   :  { %v1353_v40 = vpop.eup %1352 }
0x1750   :  { %v763_v41 = vadd.f32 1.0, %v1353_v40 }
0x1752   :  { %1354 = vrcp.f32 %v763_v41  ;;  %v775_v47 = vand.u32 2147483648, %v763_v41  ;;  %vm769_vm2 = vweird.f32 %v763_v41  ;;  %v773_v48 = vand.u32 2147483647, %v763_v41 }
0x1754   :  { %v776_v50 = vor.u32 1.1754944e-38, %v775_v47  ;;  %vm774_vm4 = vcmp.eq.f32.partialorder %v773_v48, 8.507059e+37 }
0x1758   :  { %v1355_v42 = vpop.eup %1354 }
0x1759   :  { %v765_v43 = vmul.f32 %v1355_v42, %v763_v41  ;;  %vm770_vm1 = vweird.f32 %v1355_v42 }
0x175a   :  { %vm771_vm3 = vmor %vm769_vm2, %vm770_vm1 }
0x175b   :  { %v766_v44 = vsub.f32 1.0, %v765_v43 }
0x175d   :  { %v767_v45 = vmul.f32 %v1355_v42, %v766_v44 }
0x175f   :  { %v768_v46 = vadd.f32 %v1355_v42, %v767_v45 }
0x1761   :  { %v772_v49 = vsel %vm771_vm3, %v1355_v42, %v768_v46 }
0x1762   :  { %v777_v52 = vsel %vm774_vm4, %v776_v50, %v772_v49 }
0x1763   :  { %v780_v54 = vmul.f32 %v777_v52, %v724_v6 }
0x17c0   :  { %v783_v51 = vpop.permute.xlu1 %782 }
0x17c1   :  { %v785_v53 = vmul.f32 %v783_v51, %v777_v52 }
0x17c3   :  { %787 = vrot.lane.b32.xlu2 %v785_v53, %s1407_s23 }
0x181d   :  { %v788_v14 = vpop.permute.xlu2 %787 }
0x181e   :  { %v790_v55 = vadd.f32 %v788_v14, %v780_v54  ;;  %v934_v54 = vld [vmem:[#allocation2 + $0xd] sm:$0x1] }
0x1820   :  { %1356 = vtanh.f32 %v790_v55 }
0x1826   :  { %v1357_v56 = vpop.eup %1356 }
0x1827   :  { %793 = vrot.lane.b32.xlu0 %v1357_v56, %s1407_s23 }
0x1899   :  { %v794_v57 = vpop.permute.xlu0 %793 }
0x189a   :  { %v796_v58 = vmul.f32 %v794_v57, %v777_v52 }
0x189c   :  { %798 = vrot.lane.b32.xlu1 %v796_v58, %s1408_s2 }
0x190e   :  { %v799_v59 = vpop.permute.xlu1 %798 }
0x190f   :  { %801 = vst.msk [vmem:[#allocation3 + $0xa] sm:$0x1] %vm140_vm5, %v799_v59  ;;  %1250 = vmatmul.msk.f32.vlgmr.msrb.gmra.mxu2 %vm74_vm6, %v799_v59 }
0x1992   :  { %v822_v61 = vpop.f32.mrf.mxu2 }
0x1993   :  { %v825_v62 = vadd.f32 %v822_v61, %v802_v60 }
0x1995   :  { %1358 = vtanh.f32 %v825_v62  ;;  %v1251_v0 = vmul.f32 -1.442695, %v825_v62 }
0x1997   :  { %1360 = vpow2.f32 %v1251_v0 }
0x199b   :  { %v1359_v63 = vpop.eup %1358 }
0x199c   :  { %848 = vrot.lane.b32.xlu2 %v1359_v63, %s1407_s23 }
0x199d   :  { %v1361_v1 = vpop.eup %1360 }
0x199e   :  { %v829_v2 = vadd.f32 1.0, %v1361_v1 }
0x19a0   :  { %1362 = vrcp.f32 %v829_v2  ;;  %v841_v12 = vand.u32 2147483648, %v829_v2  ;;  %vm835_vm8 = vweird.f32 %v829_v2  ;;  %v839_v13 = vand.u32 2147483647, %v829_v2 }
0x19a2   :  { %v842_v16 = vor.u32 1.1754944e-38, %v841_v12  ;;  %vm840_vm9 = vcmp.eq.f32.partialorder %v839_v13, 8.507059e+37 }
0x19a6   :  { %v1363_v5 = vpop.eup %1362 }
0x19a7   :  { %v831_v7 = vmul.f32 %v1363_v5, %v829_v2  ;;  %vm836_vm7 = vweird.f32 %v1363_v5 }
0x19a8   :  { %vm837_vm0 = vmor %vm835_vm8, %vm836_vm7 }
0x19a9   :  { %v832_v9 = vsub.f32 1.0, %v831_v7 }
0x19ab   :  { %v833_v10 = vmul.f32 %v1363_v5, %v832_v9 }
0x19ad   :  { %v834_v11 = vadd.f32 %v1363_v5, %v833_v10 }
0x19af   :  { %v838_v15 = vsel %vm837_vm0, %v1363_v5, %v834_v11 }
0x19b0   :  { %v843_v18 = vsel %vm840_vm9, %v842_v16, %v838_v15 }
0x19b1   :  { %v846_v20 = vmul.f32 %v843_v18, %v790_v55 }
0x19f6   :  { %v849_v17 = vpop.permute.xlu2 %848 }
0x19f7   :  { %v851_v19 = vmul.f32 %v849_v17, %v843_v18 }
0x19f9   :  { %853 = vrot.lane.b32.xlu0 %v851_v19, %s1407_s23 }
0x1a6b   :  { %v854_v21 = vpop.permute.xlu0 %853 }
0x1a6c   :  { %v856_v22 = vadd.f32 %v854_v21, %v846_v20  ;;  %v1000_v20 = vld [vmem:[#allocation2 + $0xe] sm:$0x1] }
0x1a6e   :  { %1364 = vtanh.f32 %v856_v22 }
0x1a74   :  { %v1365_v23 = vpop.eup %1364 }
0x1a75   :  { %859 = vrot.lane.b32.xlu1 %v1365_v23, %s1407_s23 }
0x1ae7   :  { %v860_v24 = vpop.permute.xlu1 %859 }
0x1ae8   :  { %v862_v25 = vmul.f32 %v860_v24, %v843_v18 }
0x1aea   :  { %864 = vrot.lane.b32.xlu2 %v862_v25, %s1408_s2 }
0x1b44   :  { %v865_v3 = vpop.permute.xlu2 %864 }
0x1b45   :  { %867 = vst.msk [vmem:[#allocation3 + $0xb] sm:$0x1] %vm140_vm5, %v865_v3  ;;  %1252 = vmatmul.msk.f32.vlgmr.msrb.gmra.mxu3 %vm74_vm6, %v865_v3 }
0x1b4d   :  { %1260 = vmatmul.msk.f32.vlgmr.msra.gmra.mxu3 %vm74_vm6, %v1132_v30 }
0x1bc8   :  { %v888_v31 = vpop.f32.mrf.mxu3 }
0x1bc9   :  { %v891_v6 = vadd.f32 %v888_v31, %v868_v4 }
0x1bcb   :  { %1366 = vtanh.f32 %v891_v6  ;;  %v1253_v32 = vmul.f32 -1.442695, %v891_v6 }
0x1bcd   :  { %1368 = vpow2.f32 %v1253_v32 }
0x1bd1   :  { %v1367_v8 = vpop.eup %1366 }
0x1bd2   :  { %914 = vrot.lane.b32.xlu0 %v1367_v8, %s1407_s23 }
0x1bd3   :  { %v1369_v33 = vpop.eup %1368 }
0x1bd4   :  { %v895_v34 = vadd.f32 1.0, %v1369_v33 }
0x1bd6   :  { %1370 = vrcp.f32 %v895_v34  ;;  %v907_v40 = vand.u32 2147483648, %v895_v34  ;;  %vm901_vm11 = vweird.f32 %v895_v34  ;;  %v905_v41 = vand.u32 2147483647, %v895_v34 }
0x1bd8   :  { %v908_v43 = vor.u32 1.1754944e-38, %v907_v40  ;;  %vm906_vm13 = vcmp.eq.f32.partialorder %v905_v41, 8.507059e+37 }
0x1bdc   :  { %v1371_v35 = vpop.eup %1370 }
0x1bdd   :  { %v897_v36 = vmul.f32 %v1371_v35, %v895_v34  ;;  %vm902_vm10 = vweird.f32 %v1371_v35 }
0x1bde   :  { %vm903_vm12 = vmor %vm901_vm11, %vm902_vm10 }
0x1bdf   :  { %v898_v37 = vsub.f32 1.0, %v897_v36 }
0x1be1   :  { %v899_v38 = vmul.f32 %v1371_v35, %v898_v37 }
0x1be3   :  { %v900_v39 = vadd.f32 %v1371_v35, %v899_v38 }
0x1be5   :  { %v904_v42 = vsel %vm903_vm12, %v1371_v35, %v900_v39 }
0x1be6   :  { %v909_v45 = vsel %vm906_vm13, %v908_v43, %v904_v42  ;;  %v1066_v42 = vld [vmem:[#allocation2 + $0xf] sm:$0x1] }
0x1be7   :  { %v912_v47 = vmul.f32 %v909_v45, %v856_v22 }
0x1c44   :  { %v915_v44 = vpop.permute.xlu0 %914 }
0x1c45   :  { %v917_v46 = vmul.f32 %v915_v44, %v909_v45 }
0x1c47   :  { %919 = vrot.lane.b32.xlu1 %v917_v46, %s1407_s23 }
0x1cb9   :  { %v920_v48 = vpop.permute.xlu1 %919 }
0x1cba   :  { %v922_v49 = vadd.f32 %v920_v48, %v912_v47 }
0x1cbc   :  { %1372 = vtanh.f32 %v922_v49 }
0x1cc2   :  { %v1373_v50 = vpop.eup %1372 }
0x1cc3   :  { %925 = vrot.lane.b32.xlu2 %v1373_v50, %s1407_s23 }
0x1d1d   :  { %v926_v51 = vpop.permute.xlu2 %925 }
0x1d1e   :  { %v928_v52 = vmul.f32 %v926_v51, %v909_v45 }
0x1d20   :  { %930 = vrot.lane.b32.xlu0 %v928_v52, %s1408_s2 }
0x1d92   :  { %v931_v53 = vpop.permute.xlu0 %930 }
0x1d93   :  { %933 = vst.msk [vmem:[#allocation3 + $0xc] sm:$0x1] %vm140_vm5, %v931_v53  ;;  %1254 = vmatmul.msk.f32.vlgmr.msra.gmra.mxu0 %vm74_vm6, %v931_v53 }
0x1e10   :  { %v954_v14 = vpop.f32.mrf.mxu0 }
0x1e11   :  { %v957_v55 = vadd.f32 %v954_v14, %v934_v54 }
0x1e13   :  { %1374 = vtanh.f32 %v957_v55  ;;  %v1255_v57 = vmul.f32 -1.442695, %v957_v55 }
0x1e15   :  { %1376 = vpow2.f32 %v1255_v57 }
0x1e19   :  { %v1375_v56 = vpop.eup %1374 }
0x1e1a   :  { %980 = vrot.lane.b32.xlu1 %v1375_v56, %s1407_s23 }
0x1e1b   :  { %v1377_v58 = vpop.eup %1376 }
0x1e1c   :  { %v961_v59 = vadd.f32 1.0, %v1377_v58 }
0x1e1e   :  { %1378 = vrcp.f32 %v961_v59  ;;  %v973_v1 = vand.u32 2147483648, %v961_v59  ;;  %vm967_vm15 = vweird.f32 %v961_v59  ;;  %v971_v2 = vand.u32 2147483647, %v961_v59 }
0x1e20   :  { %v974_v7 = vor.u32 1.1754944e-38, %v973_v1  ;;  %vm972_vm2 = vcmp.eq.f32.partialorder %v971_v2, 8.507059e+37 }
0x1e24   :  { %v1379_v60 = vpop.eup %1378 }
0x1e25   :  { %v963_v61 = vmul.f32 %v1379_v60, %v961_v59  ;;  %vm968_vm14 = vweird.f32 %v1379_v60 }
0x1e26   :  { %vm969_vm1 = vmor %vm967_vm15, %vm968_vm14  ;;  %vm1217_vm15 = vcmask 64512  }
0x1e27   :  { %v964_v62 = vsub.f32 1.0, %v963_v61  ;;  %v1165_v61 = vpop.f32.mrf.mxu3 }
0x1e29   :  { %v965_v63 = vmul.f32 %v1379_v60, %v964_v62 }
0x1e2b   :  { %v966_v0 = vadd.f32 %v1379_v60, %v965_v63 }
0x1e2d   :  { %v970_v5 = vsel %vm969_vm1, %v1379_v60, %v966_v0  ;;  %v1269_v60 = vld [vmem:[%s1697_s5] ss:$0 sm:$0xff]  ;;  %vm1220_vm1 = vcmask 130048  }
0x1e2e   :  { %v975_v10 = vsel %vm972_vm2, %v974_v7, %v970_v5  ;;  %v1166_v62 = vadd.f32 %v1269_v60, %v1165_v61 }
0x1e2f   :  { %v978_v12 = vmul.f32 %v975_v10, %v922_v49 }
0x1e30   :  { %v1262_v63 = vmul.f32 -1.442695, %v1166_v62 }
0x1e8c   :  { %v981_v9 = vpop.permute.xlu1 %980 }
0x1e8d   :  { %v983_v11 = vmul.f32 %v981_v9, %v975_v10 }
0x1e8f   :  { %985 = vrot.lane.b32.xlu2 %v983_v11, %s1407_s23 }
0x1ee9   :  { %v986_v13 = vpop.permute.xlu2 %985 }
0x1eea   :  { %v988_v15 = vadd.f32 %v986_v13, %v978_v12 }
0x1eec   :  { %1380 = vtanh.f32 %v988_v15 }
0x1ef2   :  { %v1381_v16 = vpop.eup %1380 }
0x1ef3   :  { %991 = vrot.lane.b32.xlu0 %v1381_v16, %s1407_s23 }
0x1f65   :  { %v992_v17 = vpop.permute.xlu0 %991 }
0x1f66   :  { %v994_v18 = vmul.f32 %v992_v17, %v975_v10 }
0x1f68   :  { %996 = vrot.lane.b32.xlu1 %v994_v18, %s1408_s2 }
0x1fda   :  { %v997_v19 = vpop.permute.xlu1 %996 }
0x1fdb   :  { %999 = vst.msk [vmem:[#allocation3 + $0xd] sm:$0x1] %vm140_vm5, %v997_v19  ;;  %1256 = vmatmul.msk.f32.vlgmr.msra.gmra.mxu1 %vm74_vm6, %v997_v19 }
0x2058   :  { %v1020_v21 = vpop.f32.mrf.mxu1 }
0x2059   :  { %v1023_v22 = vadd.f32 %v1020_v21, %v1000_v20 }
0x205b   :  { %1382 = vtanh.f32 %v1023_v22  ;;  %v1257_v24 = vmul.f32 -1.442695, %v1023_v22 }
0x205d   :  { %1384 = vpow2.f32 %v1257_v24 }
0x2061   :  { %v1383_v23 = vpop.eup %1382 }
0x2062   :  { %1046 = vrot.lane.b32.xlu2 %v1383_v23, %s1407_s23 }
0x2063   :  { %v1385_v25 = vpop.eup %1384 }
0x2064   :  { %v1027_v26 = vadd.f32 1.0, %v1385_v25 }
0x2066   :  { %1386 = vrcp.f32 %v1027_v26  ;;  %v1039_v4 = vand.u32 2147483648, %v1027_v26  ;;  %vm1033_vm4 = vweird.f32 %v1027_v26  ;;  %v1037_v31 = vand.u32 2147483647, %v1027_v26 }
0x2068   :  { %v1040_v8 = vor.u32 1.1754944e-38, %v1039_v4  ;;  %vm1038_vm8 = vcmp.eq.f32.partialorder %v1037_v31, 8.507059e+37 }
0x206c   :  { %v1387_v27 = vpop.eup %1386 }
0x206d   :  { %v1029_v28 = vmul.f32 %v1387_v27, %v1027_v26  ;;  %vm1034_vm3 = vweird.f32 %v1387_v27 }
0x206e   :  { %vm1035_vm7 = vmor %vm1033_vm4, %vm1034_vm3 }
0x206f   :  { %v1030_v29 = vsub.f32 1.0, %v1029_v28 }
0x2071   :  { %v1031_v3 = vmul.f32 %v1387_v27, %v1030_v29 }
0x2073   :  { %v1032_v30 = vadd.f32 %v1387_v27, %v1031_v3 }
0x2075   :  { %v1036_v6 = vsel %vm1035_vm7, %v1387_v27, %v1032_v30 }
0x2076   :  { %v1041_v33 = vsel %vm1038_vm8, %v1040_v8, %v1036_v6 }
0x2077   :  { %v1044_v35 = vmul.f32 %v1041_v33, %v988_v15 }
0x20bc   :  { %v1047_v32 = vpop.permute.xlu2 %1046 }
0x20bd   :  { %v1049_v34 = vmul.f32 %v1047_v32, %v1041_v33 }
0x20bf   :  { %1051 = vrot.lane.b32.xlu0 %v1049_v34, %s1407_s23 }
0x2131   :  { %v1052_v36 = vpop.permute.xlu0 %1051 }
0x2132   :  { %v1054_v37 = vadd.f32 %v1052_v36, %v1044_v35 }
0x2134   :  { %1388 = vtanh.f32 %v1054_v37 }
0x213a   :  { %v1389_v38 = vpop.eup %1388 }
0x213b   :  { %1057 = vrot.lane.b32.xlu1 %v1389_v38, %s1407_s23 }
0x21ad   :  { %v1058_v39 = vpop.permute.xlu1 %1057 }
0x21ae   :  { %v1060_v40 = vmul.f32 %v1058_v39, %v1041_v33 }
0x21b0   :  { %1062 = vrot.lane.b32.xlu2 %v1060_v40, %s1408_s2 }
0x220a   :  { %v1063_v41 = vpop.permute.xlu2 %1062 }
0x220b   :  { %1065 = vst.msk [vmem:[#allocation3 + $0xe] sm:$0x1] %vm140_vm5, %v1063_v41  ;;  %1258 = vmatmul.msk.f32.vlgmr.msra.gmra.mxu2 %vm74_vm6, %v1063_v41 }
0x228e   :  { %v1086_v43 = vpop.f32.mrf.mxu2 }
0x228f   :  { %v1089_v44 = vadd.f32 %v1086_v43, %v1066_v42 }
0x2291   :  { %1390 = vtanh.f32 %v1089_v44  ;;  %v1259_v46 = vmul.f32 -1.442695, %v1089_v44 }
0x2293   :  { %1392 = vpow2.f32 %v1259_v46 }
0x2297   :  { %v1391_v45 = vpop.eup %1390 }
0x2298   :  { %1112 = vrot.lane.b32.xlu0 %v1391_v45, %s1407_s23 }
0x2299   :  { %v1393_v47 = vpop.eup %1392 }
0x229a   :  { %v1093_v48 = vadd.f32 1.0, %v1393_v47 }
0x229c   :  { %1394 = vrcp.f32 %v1093_v48  ;;  %v1105_v54 = vand.u32 2147483648, %v1093_v48  ;;  %vm1099_vm9 = vweird.f32 %v1093_v48  ;;  %v1103_v14 = vand.u32 2147483647, %v1093_v48 }
0x229d   :  { %1396 = vpow2.f32 %v1262_v63 }
0x229e   :  { %v1106_v56 = vor.u32 1.1754944e-38, %v1105_v54  ;;  %vm1104_vm11 = vcmp.eq.f32.partialorder %v1103_v14, 8.507059e+37 }
0x22a2   :  { %v1395_v49 = vpop.eup %1394 }
0x22a3   :  { %v1095_v50 = vmul.f32 %v1395_v49, %v1093_v48  ;;  %vm1100_vm0 = vweird.f32 %v1395_v49  ;;  %v1397_v0 = vpop.eup %1396 }
0x22a4   :  { %vm1101_vm10 = vmor %vm1099_vm9, %vm1100_vm0  ;;  %v1177_v1 = vadd.f32 1.0, %v1397_v0 }
0x22a5   :  { %v1096_v51 = vsub.f32 1.0, %v1095_v50 }
0x22a6   :  { %1398 = vrcp.f32 %v1177_v1  ;;  %v1190_v15 = vand.u32 2147483648, %v1177_v1  ;;  %vm1184_vm13 = vweird.f32 %v1177_v1  ;;  %v1188_v16 = vand.u32 2147483647, %v1177_v1 }
0x22a7   :  { %v1097_v52 = vmul.f32 %v1395_v49, %v1096_v51 }
0x22a8   :  { %v1191_v18 = vor.u32 1.1754944e-38, %v1190_v15  ;;  %vm1189_vm2 = vcmp.eq.f32.partialorder %v1188_v16, 8.507059e+37 }
0x22a9   :  { %v1098_v53 = vadd.f32 %v1395_v49, %v1097_v52 }
0x22ab   :  { %v1102_v55 = vsel %vm1101_vm10, %v1395_v49, %v1098_v53 }
0x22ac   :  { %v1107_v58 = vsel %vm1104_vm11, %v1106_v56, %v1102_v55  ;;  %v1399_v2 = vpop.eup %1398 }
0x22ad   :  { %v1180_v5 = vmul.f32 %v1399_v2, %v1177_v1  ;;  %v1110_v10 = vmul.f32 %v1107_v58, %v1054_v37  ;;  %vm1185_vm12 = vweird.f32 %v1399_v2 }
0x22ae   :  { %vm1186_vm14 = vmor %vm1184_vm13, %vm1185_vm12 }
0x22af   :  { %v1181_v7 = vsub.f32 1.0, %v1180_v5 }
0x22b1   :  { %v1182_v9 = vmul.f32 %v1399_v2, %v1181_v7 }
0x22b3   :  { %v1183_v13 = vadd.f32 %v1399_v2, %v1182_v9 }
0x22b5   :  { %v1187_v17 = vsel %vm1186_vm14, %v1399_v2, %v1183_v13 }
0x22b6   :  { %v1192_v20 = vsel %vm1189_vm2, %v1191_v18, %v1187_v17 }
0x230a   :  { %v1113_v57 = vpop.permute.xlu0 %1112 }
0x230b   :  { %v1115_v59 = vmul.f32 %v1113_v57, %v1107_v58 }
0x230d   :  { %1117 = vrot.lane.b32.xlu1 %v1115_v59, %s1407_s23 }
0x2315   :  { %1211 = vrot.lane.b32.xlu1 %v1166_v62, %s1409_s10 }
0x237f   :  { %v1118_v11 = vpop.permute.xlu1 %1117 }
0x2380   :  { %v1120_v12 = vadd.f32 %v1118_v11, %v1110_v10 }
0x2382   :  { %1400 = vtanh.f32 %v1120_v12 }
0x2387   :  { %v1212_v19 = vpop.permute.xlu1 %1211 }
0x2388   :  { %v1401_v21 = vpop.eup %1400  ;;  %v1218_v22 = vsel %vm1217_vm15, %v1192_v20, %v1212_v19 }
0x2389   :  { %1221 = vst.msk [vmem:[%s1698_s6] sm:$0xff] %vm1220_vm1, %v1218_v22  ;;  %1123 = vrot.lane.b32.xlu2 %v1401_v21, %s1407_s23 }
0x23e3   :  { %v1124_v23 = vpop.permute.xlu2 %1123 }
0x23e4   :  { %v1126_v24 = vmul.f32 %v1124_v23, %v1107_v58 }
0x23e6   :  { %1128 = vrot.lane.b32.xlu0 %v1126_v24, %s1408_s2 }
0x2458   :  { %v1129_v25 = vpop.permute.xlu0 %1128 }
0x2459   :  { %1131 = vst.msk [vmem:[#allocation3 + $0xf] sm:$0x1] %vm140_vm5, %v1129_v25 }
0x2460   :  { %v1133_v26 = vld [vmem:[#allocation3 + $0x8] sm:$0xff] }
0x2461   :  { %1261 = vmatmul.msk.f32.gmra.mxu3 %vm74_vm6, %v1133_v26 }
0x24e4   :  { %v1168_v27 = vpop.f32.mrf.mxu3 }
0x24e5   :  { %v1169_v28 = vadd.f32 %v1269_v60, %v1168_v27 }
0x24e7   :  { %1213 = vrot.lane.b32.xlu2 %v1169_v28, %s1409_s10  ;;  %v1263_v29 = vmul.f32 -1.442695, %v1169_v28 }
0x24e9   :  { %1402 = vpow2.f32 %v1263_v29 }
0x24ef   :  { %v1403_v3 = vpop.eup %1402 }
0x24f0   :  { %v1178_v30 = vadd.f32 1.0, %v1403_v3 }
0x24f2   :  { %1404 = vrcp.f32 %v1178_v30  ;;  %v1205_v33 = vand.u32 2147483648, %v1178_v30  ;;  %vm1199_vm5 = vweird.f32 %v1178_v30  ;;  %v1203_v34 = vand.u32 2147483647, %v1178_v30 }
0x24f4   :  { %v1206_v36 = vor.u32 1.1754944e-38, %v1205_v33  ;;  %vm1204_vm6 = vcmp.eq.f32.partialorder %v1203_v34, 8.507059e+37 }
0x24f8   :  { %v1405_v4 = vpop.eup %1404 }
0x24f9   :  { %v1195_v31 = vmul.f32 %v1405_v4, %v1178_v30  ;;  %vm1200_vm3 = vweird.f32 %v1405_v4 }
0x24fa   :  { %vm1201_vm4 = vmor %vm1199_vm5, %vm1200_vm3 }
0x24fb   :  { %v1196_v6 = vsub.f32 1.0, %v1195_v31 }
0x24fd   :  { %v1197_v8 = vmul.f32 %v1405_v4, %v1196_v6 }
0x24ff   :  { %v1198_v32 = vadd.f32 %v1405_v4, %v1197_v8 }
0x2501   :  { %v1202_v35 = vsel %vm1201_vm4, %v1405_v4, %v1198_v32 }
0x2502   :  { %v1207_v38 = vsel %vm1204_vm6, %v1206_v36, %v1202_v35 }
0x2541   :  { %v1214_v37 = vpop.permute.xlu2 %1213 }
0x2542   :  { %v1219_v39 = vsel %vm1217_vm15, %v1207_v38, %v1214_v37 }
0x2543   :  { %1222 = vst.msk [vmem:[%s1698_s6 + $0x8] sm:$0xff] %vm1220_vm1, %v1219_v39 }

</bundles_post_ra>
